<compile_context>
chip_gen: v5e
topology: v5e:2x2
jax: 0.10.0
libtpu: 0.0.40
codegen_flags: <defaults>
</compile_context>

<pallas_src>
import numpy as np

import jax
import jax.numpy as jnp
from jax.experimental import pallas as pl
from jax.experimental.pallas import tpu as pltpu


# ---------------------------------------------------------------------------
# Static configuration (mirrors the PyTorch module)
# ---------------------------------------------------------------------------
# (Cin, Cout, k, stride, pad, Hin=Win)
_CONVS = (
    (1, 4, 4, 2, 1, 32),    # conv1: 1x32x32  -> 4x16x16
    (4, 16, 4, 2, 1, 16),   # conv2: 4x16x16  -> 16x8x8
    (16, 64, 3, 2, 1, 8),   # conv3: 16x8x8   -> 64x4x4
)
_FC1_IN, _FC1_OUT = 64 * 4 * 4, 256
_HEAD_OUT = 256


# ---------------------------------------------------------------------------
# The single fused encoder kernel
# ---------------------------------------------------------------------------
def _encoder_kernel(x_ref, w1_ref, b1_ref, w2_ref, b2_ref, w3_ref, b3_ref,
                    f1_ref, bf1_ref, f2_ref, bf2_ref,
                    mu_ref, lv_ref, act1_ref, act2_ref):
    B = mu_ref.shape[0]
    cdt = w1_ref.dtype                           # bf16 MXU operand dtype

    # Zero ONLY the H-pad rows that later taps read un-written:
    #   act1: padded rows 0 (phase 0, pair 0) and 17 (phase 1, pair 8)
    #   act2: padded row  0 (phase 0, pair 0); padded row 9 is never read.
    act1_ref[0, pl.ds(0, B), :] = jnp.zeros((B, act1_ref.shape[2]), act1_ref.dtype)
    act1_ref[1, pl.ds(8 * B, B), :] = jnp.zeros((B, act1_ref.shape[2]), act1_ref.dtype)
    act2_ref[0, pl.ds(0, B), :] = jnp.zeros((B, act2_ref.shape[2]), act2_ref.dtype)

    def conv_relu(lhs, w_ref, b_ref):
        # One stacked MXU matmul per conv:
        #   (hout*B, k*Win*Cin) @ (k*Win*Cin, Wout*Cout), f32 accumulation.
        acc = jnp.dot(lhs, w_ref[...], preferred_element_type=jnp.float32)
        return jnp.maximum(acc + b_ref[...], 0.0)

    def stacked_lhs(src_ref, k, hout):
        # src_ref: (2, pairs*B, W*C) even/odd padded-row buffer.  Tap kh needs
        # padded rows 2*ho + kh, ho in [0, hout): phase kh%2, one contiguous
        # run of `hout` row-pairs starting at pair kh//2.  Stack taps along K.
        m = hout * B
        parts = [src_ref[kh % 2, pl.ds((kh // 2) * B, m), :] for kh in range(k)]
        return jnp.concatenate(parts, axis=-1)

    def store_rows(dst_ref, y, hout):
        # Output row ho becomes padded row (ho + 1) of the next layer's buffer;
        # cast to bf16 once so downstream reads need no per-tap casts.
        yb = y.astype(dst_ref.dtype)
        for ho in range(hout):
            r = ho + 1
            dst_ref[r % 2, pl.ds((r // 2) * B, B), :] = yb[ho * B:(ho + 1) * B, :]

    # conv1: LHS already tap-stacked by the wrapper -> (16B, 128) @ (128, 64).
    y1 = conv_relu(x_ref[...], w1_ref, b1_ref)                        # (16B, 64)
    store_rows(act1_ref, y1, hout=16)

    # conv2: (8B, 256) @ (256, 128)
    y2 = conv_relu(stacked_lhs(act1_ref, k=4, hout=8), w2_ref, b2_ref)
    store_rows(act2_ref, y2, hout=8)

    # conv3: (4B, 384) @ (384, 256)
    y3 = conv_relu(stacked_lhs(act2_ref, k=3, hout=4), w3_ref, b3_ref)

    # fc1: lane-concat conv3's 4 output rows (256-wide pieces -> cheap vreg
    # placement) and contract in one (B, 1024) @ (1024, 256) matmul.
    lhs_fc = jnp.concatenate([y3[ho * B:(ho + 1) * B, :] for ho in range(4)],
                             axis=-1).astype(cdt)
    h = jnp.maximum(
        jnp.dot(lhs_fc, f1_ref[...], preferred_element_type=jnp.float32)
        + bf1_ref[...], 0.0)

    # fc2_mu || fc2_logvar: one lane-dense (256, 512) matmul with f32 operands.
    out = jnp.dot(h, f2_ref[...], preferred_element_type=jnp.float32) + bf2_ref[...]
    n = mu_ref.shape[1]
    mu_ref[...] = out[:, :n]
    lv_ref[...] = out[:, n:]


# ---------------------------------------------------------------------------
# Wrapper: one tiny boundary-only relayout fusion + the pallas_call
# ---------------------------------------------------------------------------
def encoder_forward(kparams, x):
    """x: (B, 1, 32, 32) float32 NCHW  ->  (mu, logvar), each (B, 256)."""
    assert x.shape[1:] == (1, 32, 32)
    B = x.shape[0]

    # Build conv1's tap-stacked LHS in one XLA fusion (the "relayout once in
    # the data pipeline" option):
    #   lhs1[ho*B + b, kh*32 + w] = x_pad[b, 2*ho + kh, w]   (H padded by 1).
    xp = jnp.pad(x[:, 0], ((0, 0), (1, 1), (0, 0)))                  # (B, 34, 32)
    taps = [xp[:, kh:kh + 31:2, :] for kh in range(4)]               # 4 x (B, 16, 32)
    lhs1 = jnp.stack(taps, axis=2)                                   # (B, 16, 4, 32)
    lhs1 = lhs1.transpose(1, 0, 2, 3).reshape(16 * B, 4 * 32)        # (ho, b) rows
    lhs1 = lhs1.astype(kparams["w1"].dtype)                          # bf16: half DMA

    args = (lhs1,
            kparams["w1"], kparams["b1"], kparams["w2"], kparams["b2"],
            kparams["w3"], kparams["b3"],
            kparams["fc1"], kparams["fc1_b"], kparams["fc2"], kparams["fc2_b"])

    flops = 2 * B * (16 * 128 * 64 + 8 * 256 * 128 + 4 * 384 * 256
                     + 4 * 256 * _FC1_OUT + _FC1_OUT * 2 * _HEAD_OUT)
    bytes_accessed = (sum(int(np.prod(a.shape)) * a.dtype.itemsize for a in args)
                      + 2 * B * _HEAD_OUT * 4)

    vmem = pl.BlockSpec(memory_space=pltpu.MemorySpace.VMEM)
    mu, logvar = pl.pallas_call(
        _encoder_kernel,
        out_shape=(jax.ShapeDtypeStruct((B, _HEAD_OUT), jnp.float32),
                   jax.ShapeDtypeStruct((B, _HEAD_OUT), jnp.float32)),
        in_specs=[vmem] * len(args),
        out_specs=(vmem, vmem),
        scratch_shapes=[
            pltpu.VMEM((2, 9 * B, 16 * 4), jnp.bfloat16),   # conv1 out (H-padded)
            pltpu.VMEM((2, 5 * B, 8 * 16), jnp.bfloat16),   # conv2 out (H-padded)
        ],
        cost_estimate=pl.CostEstimate(flops=flops, transcendentals=0,
                                      bytes_accessed=bytes_accessed),
    )(*args)
    return mu, logvar


# ---------------------------------------------------------------------------
# Parameters: PyTorch-layout init + one-time transform to kernel layout
# ---------------------------------------------------------------------------
def init_params(key):
    ks = jax.random.split(key, 12)

    def uniform(k, shape, fan_in):
        bound = 1.0 / np.sqrt(fan_in)
        return jax.random.uniform(k, shape, jnp.float32, -bound, bound)

    return {
        "conv1_w": uniform(ks[0], (4, 1, 4, 4), 1 * 4 * 4),
        "conv1_b": uniform(ks[1], (4,), 1 * 4 * 4),
        "conv2_w": uniform(ks[2], (16, 4, 4, 4), 4 * 4 * 4),
        "conv2_b": uniform(ks[3], (16,), 4 * 4 * 4),
        "conv3_w": uniform(ks[4], (64, 16, 3, 3), 16 * 3 * 3),
        "conv3_b": uniform(ks[5], (64,), 16 * 3 * 3),
        "fc1_w": uniform(ks[6], (_FC1_IN, _FC1_OUT), _FC1_IN),  # NCHW-flatten rows
        "fc1_b": uniform(ks[7], (_FC1_OUT,), _FC1_IN),
        "fc2_mu_w": uniform(ks[8], (_FC1_OUT, _HEAD_OUT), _FC1_OUT),
        "fc2_mu_b": uniform(ks[9], (_HEAD_OUT,), _FC1_OUT),
        "fc2_lv_w": uniform(ks[10], (_FC1_OUT, _HEAD_OUT), _FC1_OUT),
        "fc2_lv_b": uniform(ks[11], (_HEAD_OUT,), _FC1_OUT),
    }


def _conv_band_stacked(w, b, win, k, stride, pad, dtype):
    """Fold kw taps + stride + W padding into dense per-kh 'row band' matrices
    and stack all k of them along the contraction (K) axis.

    band: (k*Win*Cin, Wout*Cout); LHS lanes ordered (kh, w_in, ci),
    output lanes (w_out, co).  bias: (1, Wout*Cout) f32."""
    w = np.asarray(w, np.float32)
    b = np.asarray(b, np.float32)
    cout, cin = w.shape[0], w.shape[1]
    wout = (win + 2 * pad - k) // stride + 1
    band = np.zeros((k, win * cin, wout * cout), np.float32)
    for kh in range(k):
        for kw in range(k):
            blk = w[:, :, kh, kw].T                      # (cin, cout)
            for wo in range(wout):
                wd = stride * wo + kw - pad              # unpadded input column
                if 0 <= wd < win:                        # taps on W-pad are zero
                    band[kh, wd * cin:(wd + 1) * cin,
                         wo * cout:(wo + 1) * cout] = blk
    band = band.reshape(k * win * cin, wout * cout)
    bias = np.tile(b[None, :], (wout, 1)).reshape(1, wout * cout)
    return jnp.asarray(band, dtype), jnp.asarray(bias, jnp.float32)


def prepare_params(params, compute_dtype=jnp.bfloat16):
    """One-time init transform to kernel layout:
       * conv weights -> K-stacked row-band matmul matrices (bf16),
       * fc1 rows permuted from NCHW-flatten to the kernel's (h, w, c) lane
         order and stacked along K (bf16),
       * fc2_mu / fc2_logvar fused along N, kept f32 for head accuracy."""
    kp = {}
    for i, (_, _, k, stride, pad, win) in enumerate(_CONVS, start=1):
        wb, bb = _conv_band_stacked(params[f"conv{i}_w"], params[f"conv{i}_b"],
                                    win, k, stride, pad, compute_dtype)
        kp[f"w{i}"], kp[f"b{i}"] = wb, bb

    fc1 = np.asarray(params["fc1_w"], np.float32)                  # (1024, 256)
    h_i, w_i, c_i = np.meshgrid(np.arange(4), np.arange(4), np.arange(64),
                                indexing="ij")
    src = (c_i * 16 + h_i * 4 + w_i).reshape(4, 4 * 64)            # NCHW flat idx
    kp["fc1"] = jnp.asarray(fc1[src].reshape(4 * 256, _FC1_OUT), compute_dtype)
    kp["fc1_b"] = jnp.asarray(np.asarray(params["fc1_b"])[None, :], jnp.float32)

    fc2 = np.concatenate([np.asarray(params["fc2_mu_w"]),
                          np.asarray(params["fc2_lv_w"])], axis=1)  # (256, 512)
    fc2_b = np.concatenate([np.asarray(params["fc2_mu_b"]),
                            np.asarray(params["fc2_lv_b"])])[None, :]
    kp["fc2"] = jnp.asarray(fc2, jnp.float32)
    kp["fc2_b"] = jnp.asarray(fc2_b, jnp.float32)
    return kp


# ---------------------------------------------------------------------------
# Plain-JAX reference (PyTorch semantics) for a sanity check
# ---------------------------------------------------------------------------
def encoder_reference(params, x):
    def conv(x, w, b, stride, pad):
        y = jax.lax.conv_general_dilated(
            x, w, window_strides=(stride, stride),
            padding=[(pad, pad), (pad, pad)],
            dimension_numbers=("NCHW", "OIHW", "NCHW"))
        return y + b.reshape(1, -1, 1, 1)

    x = jax.nn.relu(conv(x, params["conv1_w"], params["conv1_b"], 2, 1))
    x = jax.nn.relu(conv(x, params["conv2_w"], params["conv2_b"], 2, 1))
    x = jax.nn.relu(conv(x, params["conv3_w"], params["conv3_b"], 2, 1))
    x = x.reshape(x.shape[0], -1)                                  # NCHW flatten
    x = jax.nn.relu(x @ params["fc1_w"] + params["fc1_b"])
    mu = x @ params["fc2_mu_w"] + params["fc2_mu_b"]
    logvar = x @ params["fc2_lv_w"] + params["fc2_lv_b"]
    return mu, logvar


if __name__ == "__main__":
    key = jax.random.PRNGKey(0)
    pkey, xkey = jax.random.split(key)
    params = init_params(pkey)
    kparams = prepare_params(params)

    x = jax.random.normal(xkey, (2, 1, 32, 32), jnp.float32)

    fwd = jax.jit(encoder_forward)
    mu, logvar = fwd(kparams, x)
    jax.block_until_ready((mu, logvar))
    assert mu.shape == (2, 256) and logvar.shape == (2, 256)

    # Correctness check (bf16 conv/fc1 operands with f32 accumulation; fc2 head
    # is f32, so the dominant error is the bf16 path -> loose tolerance).
    mu_ref, lv_ref = encoder_reference(params, x)
    np.testing.assert_allclose(np.asarray(mu), np.asarray(mu_ref),
                               rtol=5e-2, atol=5e-2)
    np.testing.assert_allclose(np.asarray(logvar), np.asarray(lv_ref),
                               rtol=5e-2, atol=5e-2)
    print("KERNEL_OK")
</pallas_src>

<mosaic_0001>
module attributes {stable_mosaic.version = 11 : i64} {
  func.func @_encoder_kernel(%arg0: memref<32x128xbf16, #tpu.memory_space<vmem>>, %arg1: memref<128x64xbf16, #tpu.memory_space<vmem>>, %arg2: memref<1x64xf32, #tpu.memory_space<vmem>>, %arg3: memref<256x128xbf16, #tpu.memory_space<vmem>>, %arg4: memref<1x128xf32, #tpu.memory_space<vmem>>, %arg5: memref<384x256xbf16, #tpu.memory_space<vmem>>, %arg6: memref<1x256xf32, #tpu.memory_space<vmem>>, %arg7: memref<1024x256xbf16, #tpu.memory_space<vmem>>, %arg8: memref<1x256xf32, #tpu.memory_space<vmem>>, %arg9: memref<256x512xf32, #tpu.memory_space<vmem>>, %arg10: memref<1x512xf32, #tpu.memory_space<vmem>>, %arg11: memref<2x256xf32, #tpu.memory_space<vmem>>, %arg12: memref<2x256xf32, #tpu.memory_space<vmem>>, %arg13: memref<2x18x64xbf16, #tpu.memory_space<vmem>>, %arg14: memref<2x10x128xbf16, #tpu.memory_space<vmem>>) attributes {dimension_semantics = [], scalar_prefetch = 0 : i64, scratch_operands = 2 : i64, tpu.core_type = #tpu.core_type<tc>} {
    %cst = arith.constant 0.000000e+00 : bf16
    %0 = vector.broadcast %cst : bf16 to vector<2x64xbf16>
    %c0 = arith.constant 0 : index
    %c0_0 = arith.constant 0 : index
    %c0_1 = arith.constant 0 : index
    %1 = vector.load %arg13[%c0, %c0_0, %c0_1] : memref<2x18x64xbf16, #tpu.memory_space<vmem>>, vector<1x2x64xbf16>
    %2 = vector.shape_cast %1 : vector<1x2x64xbf16> to vector<2x64xbf16>
    %3 = vector.shape_cast %0 : vector<2x64xbf16> to vector<1x2x64xbf16>
    tpu.vector_store %arg13[%c0, %c0_0, %c0_1], %3 {strides = array<i32>} : memref<2x18x64xbf16, #tpu.memory_space<vmem>>, vector<1x2x64xbf16>,
    %cst_2 = arith.constant 0.000000e+00 : bf16
    %4 = vector.broadcast %cst_2 : bf16 to vector<2x64xbf16>
    %c1 = arith.constant 1 : index
    %c16 = arith.constant 16 : index
    %c0_3 = arith.constant 0 : index
    %5 = vector.load %arg13[%c1, %c16, %c0_3] : memref<2x18x64xbf16, #tpu.memory_space<vmem>>, vector<1x2x64xbf16>
    %6 = vector.shape_cast %5 : vector<1x2x64xbf16> to vector<2x64xbf16>
    %7 = vector.shape_cast %4 : vector<2x64xbf16> to vector<1x2x64xbf16>
    tpu.vector_store %arg13[%c1, %c16, %c0_3], %7 {strides = array<i32>} : memref<2x18x64xbf16, #tpu.memory_space<vmem>>, vector<1x2x64xbf16>,
    %cst_4 = arith.constant 0.000000e+00 : bf16
    %8 = vector.broadcast %cst_4 : bf16 to vector<2x128xbf16>
    %c0_5 = arith.constant 0 : index
    %c0_6 = arith.constant 0 : index
    %c0_7 = arith.constant 0 : index
    %9 = vector.load %arg14[%c0_5, %c0_6, %c0_7] : memref<2x10x128xbf16, #tpu.memory_space<vmem>>, vector<1x2x128xbf16>
    %10 = vector.shape_cast %9 : vector<1x2x128xbf16> to vector<2x128xbf16>
    %11 = vector.shape_cast %8 : vector<2x128xbf16> to vector<1x2x128xbf16>
    tpu.vector_store %arg14[%c0_5, %c0_6, %c0_7], %11 {strides = array<i32>} : memref<2x10x128xbf16, #tpu.memory_space<vmem>>, vector<1x2x128xbf16>,
    %c0_8 = arith.constant 0 : index
    %c0_9 = arith.constant 0 : index
    %12 = vector.load %arg0[%c0_8, %c0_9] : memref<32x128xbf16, #tpu.memory_space<vmem>>, vector<32x128xbf16>
    %c0_10 = arith.constant 0 : index
    %c0_11 = arith.constant 0 : index
    %13 = vector.load %arg1[%c0_10, %c0_11] : memref<128x64xbf16, #tpu.memory_space<vmem>>, vector<128x64xbf16>
    %cst_12 = arith.constant dense<0.000000e+00> : vector<32x64xf32>
    %14 = tpu.matmul %12, %13, %cst_12 {dimension_numbers = #tpu.dot_dimension_numbers<[1], [0], [0], [1], [0, 0, 1, 1], [], []>} : vector<32x128xbf16>, vector<128x64xbf16>, vector<32x64xf32> -> vector<32x64xf32>
    %c0_13 = arith.constant 0 : index
    %c0_14 = arith.constant 0 : index
    %15 = vector.load %arg2[%c0_13, %c0_14] : memref<1x64xf32, #tpu.memory_space<vmem>>, vector<1x64xf32>
    %16 = vector.broadcast %15 : vector<1x64xf32> to vector<32x64xf32>
    %17 = arith.addf %14, %16 : vector<32x64xf32>
    %cst_15 = arith.constant 0.000000e+00 : f32
    %18 = vector.broadcast %cst_15 : f32 to vector<32x64xf32>
    %19 = arith.maximumf %17, %18 : vector<32x64xf32>
    %20 = arith.truncf %19 : vector<32x64xf32> to vector<32x64xbf16>
    %21 = vector.extract_strided_slice %20 {offsets = [0, 0], sizes = [2, 64], strides = [1, 1]} : vector<32x64xbf16> to vector<2x64xbf16>
    %c1_16 = arith.constant 1 : index
    %c0_17 = arith.constant 0 : index
    %c0_18 = arith.constant 0 : index
    %22 = vector.load %arg13[%c1_16, %c0_17, %c0_18] : memref<2x18x64xbf16, #tpu.memory_space<vmem>>, vector<1x2x64xbf16>
    %23 = vector.shape_cast %22 : vector<1x2x64xbf16> to vector<2x64xbf16>
    %24 = vector.shape_cast %21 : vector<2x64xbf16> to vector<1x2x64xbf16>
    tpu.vector_store %arg13[%c1_16, %c0_17, %c0_18], %24 {strides = array<i32>} : memref<2x18x64xbf16, #tpu.memory_space<vmem>>, vector<1x2x64xbf16>,
    %25 = vector.extract_strided_slice %20 {offsets = [2, 0], sizes = [2, 64], strides = [1, 1]} : vector<32x64xbf16> to vector<2x64xbf16>
    %c0_19 = arith.constant 0 : index
    %c2 = arith.constant 2 : index
    %c0_20 = arith.constant 0 : index
    %26 = vector.load %arg13[%c0_19, %c2, %c0_20] : memref<2x18x64xbf16, #tpu.memory_space<vmem>>, vector<1x2x64xbf16>
    %27 = vector.shape_cast %26 : vector<1x2x64xbf16> to vector<2x64xbf16>
    %28 = vector.shape_cast %25 : vector<2x64xbf16> to vector<1x2x64xbf16>
    tpu.vector_store %arg13[%c0_19, %c2, %c0_20], %28 {strides = array<i32>} : memref<2x18x64xbf16, #tpu.memory_space<vmem>>, vector<1x2x64xbf16>,
    %29 = vector.extract_strided_slice %20 {offsets = [4, 0], sizes = [2, 64], strides = [1, 1]} : vector<32x64xbf16> to vector<2x64xbf16>
    %c1_21 = arith.constant 1 : index
    %c2_22 = arith.constant 2 : index
    %c0_23 = arith.constant 0 : index
    %30 = vector.load %arg13[%c1_21, %c2_22, %c0_23] : memref<2x18x64xbf16, #tpu.memory_space<vmem>>, vector<1x2x64xbf16>
    %31 = vector.shape_cast %30 : vector<1x2x64xbf16> to vector<2x64xbf16>
    %32 = vector.shape_cast %29 : vector<2x64xbf16> to vector<1x2x64xbf16>
    tpu.vector_store %arg13[%c1_21, %c2_22, %c0_23], %32 {strides = array<i32>} : memref<2x18x64xbf16, #tpu.memory_space<vmem>>, vector<1x2x64xbf16>,
    %33 = vector.extract_strided_slice %20 {offsets = [6, 0], sizes = [2, 64], strides = [1, 1]} : vector<32x64xbf16> to vector<2x64xbf16>
    %c0_24 = arith.constant 0 : index
    %c4 = arith.constant 4 : index
    %c0_25 = arith.constant 0 : index
    %34 = vector.load %arg13[%c0_24, %c4, %c0_25] : memref<2x18x64xbf16, #tpu.memory_space<vmem>>, vector<1x2x64xbf16>
    %35 = vector.shape_cast %34 : vector<1x2x64xbf16> to vector<2x64xbf16>
    %36 = vector.shape_cast %33 : vector<2x64xbf16> to vector<1x2x64xbf16>
    tpu.vector_store %arg13[%c0_24, %c4, %c0_25], %36 {strides = array<i32>} : memref<2x18x64xbf16, #tpu.memory_space<vmem>>, vector<1x2x64xbf16>,
    %37 = vector.extract_strided_slice %20 {offsets = [8, 0], sizes = [2, 64], strides = [1, 1]} : vector<32x64xbf16> to vector<2x64xbf16>
    %c1_26 = arith.constant 1 : index
    %c4_27 = arith.constant 4 : index
    %c0_28 = arith.constant 0 : index
    %38 = vector.load %arg13[%c1_26, %c4_27, %c0_28] : memref<2x18x64xbf16, #tpu.memory_space<vmem>>, vector<1x2x64xbf16>
    %39 = vector.shape_cast %38 : vector<1x2x64xbf16> to vector<2x64xbf16>
    %40 = vector.shape_cast %37 : vector<2x64xbf16> to vector<1x2x64xbf16>
    tpu.vector_store %arg13[%c1_26, %c4_27, %c0_28], %40 {strides = array<i32>} : memref<2x18x64xbf16, #tpu.memory_space<vmem>>, vector<1x2x64xbf16>,
    %41 = vector.extract_strided_slice %20 {offsets = [10, 0], sizes = [2, 64], strides = [1, 1]} : vector<32x64xbf16> to vector<2x64xbf16>
    %c0_29 = arith.constant 0 : index
    %c6 = arith.constant 6 : index
    %c0_30 = arith.constant 0 : index
    %42 = vector.load %arg13[%c0_29, %c6, %c0_30] : memref<2x18x64xbf16, #tpu.memory_space<vmem>>, vector<1x2x64xbf16>
    %43 = vector.shape_cast %42 : vector<1x2x64xbf16> to vector<2x64xbf16>
    %44 = vector.shape_cast %41 : vector<2x64xbf16> to vector<1x2x64xbf16>
    tpu.vector_store %arg13[%c0_29, %c6, %c0_30], %44 {strides = array<i32>} : memref<2x18x64xbf16, #tpu.memory_space<vmem>>, vector<1x2x64xbf16>,
    %45 = vector.extract_strided_slice %20 {offsets = [12, 0], sizes = [2, 64], strides = [1, 1]} : vector<32x64xbf16> to vector<2x64xbf16>
    %c1_31 = arith.constant 1 : index
    %c6_32 = arith.constant 6 : index
    %c0_33 = arith.constant 0 : index
    %46 = vector.load %arg13[%c1_31, %c6_32, %c0_33] : memref<2x18x64xbf16, #tpu.memory_space<vmem>>, vector<1x2x64xbf16>
    %47 = vector.shape_cast %46 : vector<1x2x64xbf16> to vector<2x64xbf16>
    %48 = vector.shape_cast %45 : vector<2x64xbf16> to vector<1x2x64xbf16>
    tpu.vector_store %arg13[%c1_31, %c6_32, %c0_33], %48 {strides = array<i32>} : memref<2x18x64xbf16, #tpu.memory_space<vmem>>, vector<1x2x64xbf16>,
    %49 = vector.extract_strided_slice %20 {offsets = [14, 0], sizes = [2, 64], strides = [1, 1]} : vector<32x64xbf16> to vector<2x64xbf16>
    %c0_34 = arith.constant 0 : index
    %c8 = arith.constant 8 : index
    %c0_35 = arith.constant 0 : index
    %50 = vector.load %arg13[%c0_34, %c8, %c0_35] : memref<2x18x64xbf16, #tpu.memory_space<vmem>>, vector<1x2x64xbf16>
    %51 = vector.shape_cast %50 : vector<1x2x64xbf16> to vector<2x64xbf16>
    %52 = vector.shape_cast %49 : vector<2x64xbf16> to vector<1x2x64xbf16>
    tpu.vector_store %arg13[%c0_34, %c8, %c0_35], %52 {strides = array<i32>} : memref<2x18x64xbf16, #tpu.memory_space<vmem>>, vector<1x2x64xbf16>,
    %53 = vector.extract_strided_slice %20 {offsets = [16, 0], sizes = [2, 64], strides = [1, 1]} : vector<32x64xbf16> to vector<2x64xbf16>
    %c1_36 = arith.constant 1 : index
    %c8_37 = arith.constant 8 : index
    %c0_38 = arith.constant 0 : index
    %54 = vector.load %arg13[%c1_36, %c8_37, %c0_38] : memref<2x18x64xbf16, #tpu.memory_space<vmem>>, vector<1x2x64xbf16>
    %55 = vector.shape_cast %54 : vector<1x2x64xbf16> to vector<2x64xbf16>
    %56 = vector.shape_cast %53 : vector<2x64xbf16> to vector<1x2x64xbf16>
    tpu.vector_store %arg13[%c1_36, %c8_37, %c0_38], %56 {strides = array<i32>} : memref<2x18x64xbf16, #tpu.memory_space<vmem>>, vector<1x2x64xbf16>,
    %57 = vector.extract_strided_slice %20 {offsets = [18, 0], sizes = [2, 64], strides = [1, 1]} : vector<32x64xbf16> to vector<2x64xbf16>
    %c0_39 = arith.constant 0 : index
    %c10 = arith.constant 10 : index
    %c0_40 = arith.constant 0 : index
    %58 = vector.load %arg13[%c0_39, %c10, %c0_40] : memref<2x18x64xbf16, #tpu.memory_space<vmem>>, vector<1x2x64xbf16>
    %59 = vector.shape_cast %58 : vector<1x2x64xbf16> to vector<2x64xbf16>
    %60 = vector.shape_cast %57 : vector<2x64xbf16> to vector<1x2x64xbf16>
    tpu.vector_store %arg13[%c0_39, %c10, %c0_40], %60 {strides = array<i32>} : memref<2x18x64xbf16, #tpu.memory_space<vmem>>, vector<1x2x64xbf16>,
    %61 = vector.extract_strided_slice %20 {offsets = [20, 0], sizes = [2, 64], strides = [1, 1]} : vector<32x64xbf16> to vector<2x64xbf16>
    %c1_41 = arith.constant 1 : index
    %c10_42 = arith.constant 10 : index
    %c0_43 = arith.constant 0 : index
    %62 = vector.load %arg13[%c1_41, %c10_42, %c0_43] : memref<2x18x64xbf16, #tpu.memory_space<vmem>>, vector<1x2x64xbf16>
    %63 = vector.shape_cast %62 : vector<1x2x64xbf16> to vector<2x64xbf16>
    %64 = vector.shape_cast %61 : vector<2x64xbf16> to vector<1x2x64xbf16>
    tpu.vector_store %arg13[%c1_41, %c10_42, %c0_43], %64 {strides = array<i32>} : memref<2x18x64xbf16, #tpu.memory_space<vmem>>, vector<1x2x64xbf16>,
    %65 = vector.extract_strided_slice %20 {offsets = [22, 0], sizes = [2, 64], strides = [1, 1]} : vector<32x64xbf16> to vector<2x64xbf16>
    %c0_44 = arith.constant 0 : index
    %c12 = arith.constant 12 : index
    %c0_45 = arith.constant 0 : index
    %66 = vector.load %arg13[%c0_44, %c12, %c0_45] : memref<2x18x64xbf16, #tpu.memory_space<vmem>>, vector<1x2x64xbf16>
    %67 = vector.shape_cast %66 : vector<1x2x64xbf16> to vector<2x64xbf16>
    %68 = vector.shape_cast %65 : vector<2x64xbf16> to vector<1x2x64xbf16>
    tpu.vector_store %arg13[%c0_44, %c12, %c0_45], %68 {strides = array<i32>} : memref<2x18x64xbf16, #tpu.memory_space<vmem>>, vector<1x2x64xbf16>,
    %69 = vector.extract_strided_slice %20 {offsets = [24, 0], sizes = [2, 64], strides = [1, 1]} : vector<32x64xbf16> to vector<2x64xbf16>
    %c1_46 = arith.constant 1 : index
    %c12_47 = arith.constant 12 : index
    %c0_48 = arith.constant 0 : index
    %70 = vector.load %arg13[%c1_46, %c12_47, %c0_48] : memref<2x18x64xbf16, #tpu.memory_space<vmem>>, vector<1x2x64xbf16>
    %71 = vector.shape_cast %70 : vector<1x2x64xbf16> to vector<2x64xbf16>
    %72 = vector.shape_cast %69 : vector<2x64xbf16> to vector<1x2x64xbf16>
    tpu.vector_store %arg13[%c1_46, %c12_47, %c0_48], %72 {strides = array<i32>} : memref<2x18x64xbf16, #tpu.memory_space<vmem>>, vector<1x2x64xbf16>,
    %73 = vector.extract_strided_slice %20 {offsets = [26, 0], sizes = [2, 64], strides = [1, 1]} : vector<32x64xbf16> to vector<2x64xbf16>
    %c0_49 = arith.constant 0 : index
    %c14 = arith.constant 14 : index
    %c0_50 = arith.constant 0 : index
    %74 = vector.load %arg13[%c0_49, %c14, %c0_50] : memref<2x18x64xbf16, #tpu.memory_space<vmem>>, vector<1x2x64xbf16>
    %75 = vector.shape_cast %74 : vector<1x2x64xbf16> to vector<2x64xbf16>
    %76 = vector.shape_cast %73 : vector<2x64xbf16> to vector<1x2x64xbf16>
    tpu.vector_store %arg13[%c0_49, %c14, %c0_50], %76 {strides = array<i32>} : memref<2x18x64xbf16, #tpu.memory_space<vmem>>, vector<1x2x64xbf16>,
    %77 = vector.extract_strided_slice %20 {offsets = [28, 0], sizes = [2, 64], strides = [1, 1]} : vector<32x64xbf16> to vector<2x64xbf16>
    %c1_51 = arith.constant 1 : index
    %c14_52 = arith.constant 14 : index
    %c0_53 = arith.constant 0 : index
    %78 = vector.load %arg13[%c1_51, %c14_52, %c0_53] : memref<2x18x64xbf16, #tpu.memory_space<vmem>>, vector<1x2x64xbf16>
    %79 = vector.shape_cast %78 : vector<1x2x64xbf16> to vector<2x64xbf16>
    %80 = vector.shape_cast %77 : vector<2x64xbf16> to vector<1x2x64xbf16>
    tpu.vector_store %arg13[%c1_51, %c14_52, %c0_53], %80 {strides = array<i32>} : memref<2x18x64xbf16, #tpu.memory_space<vmem>>, vector<1x2x64xbf16>,
    %81 = vector.extract_strided_slice %20 {offsets = [30, 0], sizes = [2, 64], strides = [1, 1]} : vector<32x64xbf16> to vector<2x64xbf16>
    %c0_54 = arith.constant 0 : index
    %c16_55 = arith.constant 16 : index
    %c0_56 = arith.constant 0 : index
    %82 = vector.load %arg13[%c0_54, %c16_55, %c0_56] : memref<2x18x64xbf16, #tpu.memory_space<vmem>>, vector<1x2x64xbf16>
    %83 = vector.shape_cast %82 : vector<1x2x64xbf16> to vector<2x64xbf16>
    %84 = vector.shape_cast %81 : vector<2x64xbf16> to vector<1x2x64xbf16>
    tpu.vector_store %arg13[%c0_54, %c16_55, %c0_56], %84 {strides = array<i32>} : memref<2x18x64xbf16, #tpu.memory_space<vmem>>, vector<1x2x64xbf16>,
    %c0_57 = arith.constant 0 : index
    %c0_58 = arith.constant 0 : index
    %c0_59 = arith.constant 0 : index
    %85 = vector.load %arg13[%c0_57, %c0_58, %c0_59] : memref<2x18x64xbf16, #tpu.memory_space<vmem>>, vector<1x16x64xbf16>
    %86 = vector.shape_cast %85 : vector<1x16x64xbf16> to vector<16x64xbf16>
    %c1_60 = arith.constant 1 : index
    %c0_61 = arith.constant 0 : index
    %c0_62 = arith.constant 0 : index
    %87 = vector.load %arg13[%c1_60, %c0_61, %c0_62] : memref<2x18x64xbf16, #tpu.memory_space<vmem>>, vector<1x16x64xbf16>
    %88 = vector.shape_cast %87 : vector<1x16x64xbf16> to vector<16x64xbf16>
    %c0_63 = arith.constant 0 : index
    %c2_64 = arith.constant 2 : index
    %c0_65 = arith.constant 0 : index
    %89 = vector.load %arg13[%c0_63, %c2_64, %c0_65] : memref<2x18x64xbf16, #tpu.memory_space<vmem>>, vector<1x16x64xbf16>
    %90 = vector.shape_cast %89 : vector<1x16x64xbf16> to vector<16x64xbf16>
    %c1_66 = arith.constant 1 : index
    %c2_67 = arith.constant 2 : index
    %c0_68 = arith.constant 0 : index
    %91 = vector.load %arg13[%c1_66, %c2_67, %c0_68] : memref<2x18x64xbf16, #tpu.memory_space<vmem>>, vector<1x16x64xbf16>
    %92 = vector.shape_cast %91 : vector<1x16x64xbf16> to vector<16x64xbf16>
    %93 = tpu.concatenate %86, %88, %90, %92 in 1 : vector<16x64xbf16>, vector<16x64xbf16>, vector<16x64xbf16>, vector<16x64xbf16> -> vector<16x256xbf16>
    %c0_69 = arith.constant 0 : index
    %c0_70 = arith.constant 0 : index
    %94 = vector.load %arg3[%c0_69, %c0_70] : memref<256x128xbf16, #tpu.memory_space<vmem>>, vector<256x128xbf16>
    %cst_71 = arith.constant dense<0.000000e+00> : vector<16x128xf32>
    %95 = tpu.matmul %93, %94, %cst_71 {dimension_numbers = #tpu.dot_dimension_numbers<[1], [0], [0], [1], [0, 0, 1, 1], [], []>} : vector<16x256xbf16>, vector<256x128xbf16>, vector<16x128xf32> -> vector<16x128xf32>
    %c0_72 = arith.constant 0 : index
    %c0_73 = arith.constant 0 : index
    %96 = vector.load %arg4[%c0_72, %c0_73] : memref<1x128xf32, #tpu.memory_space<vmem>>, vector<1x128xf32>
    %97 = vector.broadcast %96 : vector<1x128xf32> to vector<16x128xf32>
    %98 = arith.addf %95, %97 : vector<16x128xf32>
    %cst_74 = arith.constant 0.000000e+00 : f32
    %99 = vector.broadcast %cst_74 : f32 to vector<16x128xf32>
    %100 = arith.maximumf %98, %99 : vector<16x128xf32>
    %101 = arith.truncf %100 : vector<16x128xf32> to vector<16x128xbf16>
    %102 = vector.extract_strided_slice %101 {offsets = [0, 0], sizes = [2, 128], strides = [1, 1]} : vector<16x128xbf16> to vector<2x128xbf16>
    %c1_75 = arith.constant 1 : index
    %c0_76 = arith.constant 0 : index
    %c0_77 = arith.constant 0 : index
    %103 = vector.load %arg14[%c1_75, %c0_76, %c0_77] : memref<2x10x128xbf16, #tpu.memory_space<vmem>>, vector<1x2x128xbf16>
    %104 = vector.shape_cast %103 : vector<1x2x128xbf16> to vector<2x128xbf16>
    %105 = vector.shape_cast %102 : vector<2x128xbf16> to vector<1x2x128xbf16>
    tpu.vector_store %arg14[%c1_75, %c0_76, %c0_77], %105 {strides = array<i32>} : memref<2x10x128xbf16, #tpu.memory_space<vmem>>, vector<1x2x128xbf16>,
    %106 = vector.extract_strided_slice %101 {offsets = [2, 0], sizes = [2, 128], strides = [1, 1]} : vector<16x128xbf16> to vector<2x128xbf16>
    %c0_78 = arith.constant 0 : index
    %c2_79 = arith.constant 2 : index
    %c0_80 = arith.constant 0 : index
    %107 = vector.load %arg14[%c0_78, %c2_79, %c0_80] : memref<2x10x128xbf16, #tpu.memory_space<vmem>>, vector<1x2x128xbf16>
    %108 = vector.shape_cast %107 : vector<1x2x128xbf16> to vector<2x128xbf16>
    %109 = vector.shape_cast %106 : vector<2x128xbf16> to vector<1x2x128xbf16>
    tpu.vector_store %arg14[%c0_78, %c2_79, %c0_80], %109 {strides = array<i32>} : memref<2x10x128xbf16, #tpu.memory_space<vmem>>, vector<1x2x128xbf16>,
    %110 = vector.extract_strided_slice %101 {offsets = [4, 0], sizes = [2, 128], strides = [1, 1]} : vector<16x128xbf16> to vector<2x128xbf16>
    %c1_81 = arith.constant 1 : index
    %c2_82 = arith.constant 2 : index
    %c0_83 = arith.constant 0 : index
    %111 = vector.load %arg14[%c1_81, %c2_82, %c0_83] : memref<2x10x128xbf16, #tpu.memory_space<vmem>>, vector<1x2x128xbf16>
    %112 = vector.shape_cast %111 : vector<1x2x128xbf16> to vector<2x128xbf16>
    %113 = vector.shape_cast %110 : vector<2x128xbf16> to vector<1x2x128xbf16>
    tpu.vector_store %arg14[%c1_81, %c2_82, %c0_83], %113 {strides = array<i32>} : memref<2x10x128xbf16, #tpu.memory_space<vmem>>, vector<1x2x128xbf16>,
    %114 = vector.extract_strided_slice %101 {offsets = [6, 0], sizes = [2, 128], strides = [1, 1]} : vector<16x128xbf16> to vector<2x128xbf16>
    %c0_84 = arith.constant 0 : index
    %c4_85 = arith.constant 4 : index
    %c0_86 = arith.constant 0 : index
    %115 = vector.load %arg14[%c0_84, %c4_85, %c0_86] : memref<2x10x128xbf16, #tpu.memory_space<vmem>>, vector<1x2x128xbf16>
    %116 = vector.shape_cast %115 : vector<1x2x128xbf16> to vector<2x128xbf16>
    %117 = vector.shape_cast %114 : vector<2x128xbf16> to vector<1x2x128xbf16>
    tpu.vector_store %arg14[%c0_84, %c4_85, %c0_86], %117 {strides = array<i32>} : memref<2x10x128xbf16, #tpu.memory_space<vmem>>, vector<1x2x128xbf16>,
    %118 = vector.extract_strided_slice %101 {offsets = [8, 0], sizes = [2, 128], strides = [1, 1]} : vector<16x128xbf16> to vector<2x128xbf16>
    %c1_87 = arith.constant 1 : index
    %c4_88 = arith.constant 4 : index
    %c0_89 = arith.constant 0 : index
    %119 = vector.load %arg14[%c1_87, %c4_88, %c0_89] : memref<2x10x128xbf16, #tpu.memory_space<vmem>>, vector<1x2x128xbf16>
    %120 = vector.shape_cast %119 : vector<1x2x128xbf16> to vector<2x128xbf16>
    %121 = vector.shape_cast %118 : vector<2x128xbf16> to vector<1x2x128xbf16>
    tpu.vector_store %arg14[%c1_87, %c4_88, %c0_89], %121 {strides = array<i32>} : memref<2x10x128xbf16, #tpu.memory_space<vmem>>, vector<1x2x128xbf16>,
    %122 = vector.extract_strided_slice %101 {offsets = [10, 0], sizes = [2, 128], strides = [1, 1]} : vector<16x128xbf16> to vector<2x128xbf16>
    %c0_90 = arith.constant 0 : index
    %c6_91 = arith.constant 6 : index
    %c0_92 = arith.constant 0 : index
    %123 = vector.load %arg14[%c0_90, %c6_91, %c0_92] : memref<2x10x128xbf16, #tpu.memory_space<vmem>>, vector<1x2x128xbf16>
    %124 = vector.shape_cast %123 : vector<1x2x128xbf16> to vector<2x128xbf16>
    %125 = vector.shape_cast %122 : vector<2x128xbf16> to vector<1x2x128xbf16>
    tpu.vector_store %arg14[%c0_90, %c6_91, %c0_92], %125 {strides = array<i32>} : memref<2x10x128xbf16, #tpu.memory_space<vmem>>, vector<1x2x128xbf16>,
    %126 = vector.extract_strided_slice %101 {offsets = [12, 0], sizes = [2, 128], strides = [1, 1]} : vector<16x128xbf16> to vector<2x128xbf16>
    %c1_93 = arith.constant 1 : index
    %c6_94 = arith.constant 6 : index
    %c0_95 = arith.constant 0 : index
    %127 = vector.load %arg14[%c1_93, %c6_94, %c0_95] : memref<2x10x128xbf16, #tpu.memory_space<vmem>>, vector<1x2x128xbf16>
    %128 = vector.shape_cast %127 : vector<1x2x128xbf16> to vector<2x128xbf16>
    %129 = vector.shape_cast %126 : vector<2x128xbf16> to vector<1x2x128xbf16>
    tpu.vector_store %arg14[%c1_93, %c6_94, %c0_95], %129 {strides = array<i32>} : memref<2x10x128xbf16, #tpu.memory_space<vmem>>, vector<1x2x128xbf16>,
    %130 = vector.extract_strided_slice %101 {offsets = [14, 0], sizes = [2, 128], strides = [1, 1]} : vector<16x128xbf16> to vector<2x128xbf16>
    %c0_96 = arith.constant 0 : index
    %c8_97 = arith.constant 8 : index
    %c0_98 = arith.constant 0 : index
    %131 = vector.load %arg14[%c0_96, %c8_97, %c0_98] : memref<2x10x128xbf16, #tpu.memory_space<vmem>>, vector<1x2x128xbf16>
    %132 = vector.shape_cast %131 : vector<1x2x128xbf16> to vector<2x128xbf16>
    %133 = vector.shape_cast %130 : vector<2x128xbf16> to vector<1x2x128xbf16>
    tpu.vector_store %arg14[%c0_96, %c8_97, %c0_98], %133 {strides = array<i32>} : memref<2x10x128xbf16, #tpu.memory_space<vmem>>, vector<1x2x128xbf16>,
    %c0_99 = arith.constant 0 : index
    %c0_100 = arith.constant 0 : index
    %c0_101 = arith.constant 0 : index
    %134 = vector.load %arg14[%c0_99, %c0_100, %c0_101] : memref<2x10x128xbf16, #tpu.memory_space<vmem>>, vector<1x8x128xbf16>
    %135 = vector.shape_cast %134 : vector<1x8x128xbf16> to vector<8x128xbf16>
    %c1_102 = arith.constant 1 : index
    %c0_103 = arith.constant 0 : index
    %c0_104 = arith.constant 0 : index
    %136 = vector.load %arg14[%c1_102, %c0_103, %c0_104] : memref<2x10x128xbf16, #tpu.memory_space<vmem>>, vector<1x8x128xbf16>
    %137 = vector.shape_cast %136 : vector<1x8x128xbf16> to vector<8x128xbf16>
    %c0_105 = arith.constant 0 : index
    %c2_106 = arith.constant 2 : index
    %c0_107 = arith.constant 0 : index
    %138 = vector.load %arg14[%c0_105, %c2_106, %c0_107] : memref<2x10x128xbf16, #tpu.memory_space<vmem>>, vector<1x8x128xbf16>
    %139 = vector.shape_cast %138 : vector<1x8x128xbf16> to vector<8x128xbf16>
    %140 = tpu.concatenate %135, %137, %139 in 1 : vector<8x128xbf16>, vector<8x128xbf16>, vector<8x128xbf16> -> vector<8x384xbf16>
    %c0_108 = arith.constant 0 : index
    %c0_109 = arith.constant 0 : index
    %141 = vector.load %arg5[%c0_108, %c0_109] : memref<384x256xbf16, #tpu.memory_space<vmem>>, vector<384x256xbf16>
    %cst_110 = arith.constant dense<0.000000e+00> : vector<8x256xf32>
    %142 = tpu.matmul %140, %141, %cst_110 {dimension_numbers = #tpu.dot_dimension_numbers<[1], [0], [0], [1], [0, 0, 1, 1], [], []>} : vector<8x384xbf16>, vector<384x256xbf16>, vector<8x256xf32> -> vector<8x256xf32>
    %c0_111 = arith.constant 0 : index
    %c0_112 = arith.constant 0 : index
    %143 = vector.load %arg6[%c0_111, %c0_112] : memref<1x256xf32, #tpu.memory_space<vmem>>, vector<1x256xf32>
    %144 = vector.broadcast %143 : vector<1x256xf32> to vector<8x256xf32>
    %145 = arith.addf %142, %144 : vector<8x256xf32>
    %cst_113 = arith.constant 0.000000e+00 : f32
    %146 = vector.broadcast %cst_113 : f32 to vector<8x256xf32>
    %147 = arith.maximumf %145, %146 : vector<8x256xf32>
    %148 = vector.extract_strided_slice %147 {offsets = [0, 0], sizes = [2, 256], strides = [1, 1]} : vector<8x256xf32> to vector<2x256xf32>
    %149 = vector.extract_strided_slice %147 {offsets = [2, 0], sizes = [2, 256], strides = [1, 1]} : vector<8x256xf32> to vector<2x256xf32>
    %150 = vector.extract_strided_slice %147 {offsets = [4, 0], sizes = [2, 256], strides = [1, 1]} : vector<8x256xf32> to vector<2x256xf32>
    %151 = vector.extract_strided_slice %147 {offsets = [6, 0], sizes = [2, 256], strides = [1, 1]} : vector<8x256xf32> to vector<2x256xf32>
    %152 = tpu.concatenate %148, %149, %150, %151 in 1 : vector<2x256xf32>, vector<2x256xf32>, vector<2x256xf32>, vector<2x256xf32> -> vector<2x1024xf32>
    %153 = arith.truncf %152 : vector<2x1024xf32> to vector<2x1024xbf16>
    %c0_114 = arith.constant 0 : index
    %c0_115 = arith.constant 0 : index
    %154 = vector.load %arg7[%c0_114, %c0_115] : memref<1024x256xbf16, #tpu.memory_space<vmem>>, vector<1024x256xbf16>
    %cst_116 = arith.constant dense<0.000000e+00> : vector<2x256xf32>
    %155 = tpu.matmul %153, %154, %cst_116 {dimension_numbers = #tpu.dot_dimension_numbers<[1], [0], [0], [1], [0, 0, 1, 1], [], []>} : vector<2x1024xbf16>, vector<1024x256xbf16>, vector<2x256xf32> -> vector<2x256xf32>
    %c0_117 = arith.constant 0 : index
    %c0_118 = arith.constant 0 : index
    %156 = vector.load %arg8[%c0_117, %c0_118] : memref<1x256xf32, #tpu.memory_space<vmem>>, vector<1x256xf32>
    %157 = vector.broadcast %156 : vector<1x256xf32> to vector<2x256xf32>
    %158 = arith.addf %155, %157 : vector<2x256xf32>
    %cst_119 = arith.constant 0.000000e+00 : f32
    %159 = vector.broadcast %cst_119 : f32 to vector<2x256xf32>
    %160 = arith.maximumf %158, %159 : vector<2x256xf32>
    %c0_120 = arith.constant 0 : index
    %c0_121 = arith.constant 0 : index
    %161 = vector.load %arg9[%c0_120, %c0_121] : memref<256x512xf32, #tpu.memory_space<vmem>>, vector<256x512xf32>
    %cst_122 = arith.constant dense<0.000000e+00> : vector<2x512xf32>
    %162 = tpu.matmul %160, %161, %cst_122 {dimension_numbers = #tpu.dot_dimension_numbers<[1], [0], [0], [1], [0, 0, 1, 1], [], []>} : vector<2x256xf32>, vector<256x512xf32>, vector<2x512xf32> -> vector<2x512xf32>
    %c0_123 = arith.constant 0 : index
    %c0_124 = arith.constant 0 : index
    %163 = vector.load %arg10[%c0_123, %c0_124] : memref<1x512xf32, #tpu.memory_space<vmem>>, vector<1x512xf32>
    %164 = vector.broadcast %163 : vector<1x512xf32> to vector<2x512xf32>
    %165 = arith.addf %162, %164 : vector<2x512xf32>
    %166 = vector.extract_strided_slice %165 {offsets = [0, 0], sizes = [2, 256], strides = [1, 1]} : vector<2x512xf32> to vector<2x256xf32>
    %c0_125 = arith.constant 0 : index
    %c0_126 = arith.constant 0 : index
    %167 = vector.load %arg11[%c0_125, %c0_126] : memref<2x256xf32, #tpu.memory_space<vmem>>, vector<2x256xf32>
    tpu.vector_store %arg11[%c0_125, %c0_126], %166 {strides = array<i32>} : memref<2x256xf32, #tpu.memory_space<vmem>>, vector<2x256xf32>,
    %168 = vector.extract_strided_slice %165 {offsets = [0, 256], sizes = [2, 256], strides = [1, 1]} : vector<2x512xf32> to vector<2x256xf32>
    %c0_127 = arith.constant 0 : index
    %c0_128 = arith.constant 0 : index
    %169 = vector.load %arg12[%c0_127, %c0_128] : memref<2x256xf32, #tpu.memory_space<vmem>>, vector<2x256xf32>
    tpu.vector_store %arg12[%c0_127, %c0_128], %168 {strides = array<i32>} : memref<2x256xf32, #tpu.memory_space<vmem>>, vector<2x256xf32>,
    return
  }
}

</mosaic_0001>

<bundles_post_ra>
// kernel: encoder_forward.1
= control target key start
LH: loop header
LB: loop body
LE: loop exit
PB: predicated region body
PF: predicated region fallthrough
CT: control target
= control target key end

     0   :  { %18 = vsyncpa [#allocation5], 0  ;;  %s3899_s0 = inlined_call_operand.vmem [shape: bf16[32,128], index: 0, kind: input, shape index: {}]   ;;  %s3900_s1 = inlined_call_operand.vmem [shape: bf16[128,64], index: 1, kind: input, shape index: {}]   ;;  %s3901_s2 = inlined_call_operand.vmem [shape: f32[1,64], index: 2, kind: input, shape index: {}]   ;;  %s3902_s3 = inlined_call_operand.vmem [shape: bf16[256,128], index: 3, kind: input, shape index: {}]   ;;  %s3903_s4 = inlined_call_operand.vmem [shape: f32[1,128], index: 4, kind: input, shape index: {}]   ;;  %s3904_s5 = inlined_call_operand.vmem [shape: bf16[384,256], index: 5, kind: input, shape index: {}]   ;;  %s3905_s6 = inlined_call_operand.vmem [shape: f32[1,256], index: 6, kind: input, shape index: {}]   ;;  %s3906_s7 = inlined_call_operand.hbm [shape: bf16[1024,256], index: 7, kind: input, shape index: {}]   ;;  %s3907_s8 = inlined_call_operand.vmem [shape: f32[1,256], index: 8, kind: input, shape index: {}]   ;;  %s3908_s9 = inlined_call_operand.hbm [shape: f32[256,512], index: 9, kind: input, shape index: {}]   ;;  %s3909_s10 = inlined_call_operand.vmem [shape: f32[1,512], index: 10, kind: input, shape index: {}]   ;;  %s3910_s11 = inlined_call_operand.hbm [shape: f32[2,256], index: 11, kind: output, shape index: {0}]   ;;  %s3911_s12 = inlined_call_operand.hbm [shape: f32[2,256], index: 12, kind: output, shape index: {1}]  }
   0x1   :  { %19 = vsyncpa [#allocation8], 0 }
   0x2   :  { %20 = vsyncpa [#allocation6], 0 }
   0x3   :  { %21 = vsyncpa [#allocation11], 0  ;;  %s40_s23 = sshll.u32 %s3906_s7, 4  ;;  %s3343_s24 = smov [#allocation4]   ;;  %s41_s23 = int_to_ptr.hbm [resolvable:$true] %s40_s23 }
   0x4   :  { %s42_s25 = sshll.u32 %s3343_s24, 4  ;;  %s55_s28 = sshll.u32 %s3908_s9, 4  ;;  %s43_s25 = int_to_ptr.vmem [resolvable:$true] %s42_s25  ;;  %s56_s28 = int_to_ptr.hbm [resolvable:$true] %s55_s28 }
   0x5   :  { %s3344_s29 = smov 128   ;;  %s3345_s30 = smov 8  }
   0x6   :  { %48 = dma.hbm_to_vmem [thread:$0]  %s41_s23, 16384, %s43_s25, [#allocation5], %s3344_s29, %s3344_s29, %s3345_s30  }
   0x7   :  { %s3346_s13 = smov [#allocation7]   ;;  %s3347_s15 = smov 512  }
   0x8   :  { %s57_s14 = sshll.u32 %s3346_s13, 4  ;;  %s3348_s16 = smov 32   ;;  %s58_s14 = int_to_ptr.vmem [resolvable:$true] %s57_s14 }
   0x9   :  { %63 = dma.hbm_to_vmem [thread:$0]  %s56_s28, 16384, %s58_s14, [#allocation8], %s3347_s15, %s3347_s15, %s3348_s16  }
   0xa   :  { %3332 = dma.done.wait [#allocation5], 16384  }
   0xb   :  { %3333 = vsyncadd [#allocation5], 4294950912 }
   0xc   :  { %3334 = dma.done.wait [#allocation8], 16384  }
   0xd   :  { %3335 = vsyncadd [#allocation8], 4294950912  ;;  %v3023_v0 = vld [vmem:[%s3900_s1 + $0x38] sm:$0xff]  ;;  %v3022_v1 = vld [vmem:[%s3900_s1 + $0x30] sm:$0xff]  ;;  %vm75_vm0 = vcmask 516096   ;;  %v3349_v6 = vmov 0  }
   0xe   :  { %164 = vmatpush.bf16.msra.mxu0 %v3023_v0  ;;  %v3021_v2 = vld [vmem:[%s3900_s1 + $0x28] sm:$0xff]  ;;  %v3020_v3 = vld [vmem:[%s3900_s1 + $0x20] sm:$0xff]  ;;  %v3019_v4 = vld [vmem:[%s3900_s1 + $0x18] sm:$0xff]  ;;  %76 = vst.msk [vmem:[#allocation2] sm:$0x1] %vm75_vm0, %v3349_v6  ;;  %vm192_vm1 = vcmask 517121  }
   0xf   :  { %v3018_v5 = vld [vmem:[%s3900_s1 + $0x10] sm:$0xff]  ;;  %78 = vst.msk [vmem:[#allocation2 + $0x14] sm:$0x1] %vm75_vm0, %v3349_v6  ;;  %v3017_v7 = vld [vmem:[%s3900_s1 + $0x8] sm:$0xff]  ;;  %v3016_v8 = vld [vmem:[%s3900_s1] sm:$0xff]  ;;  %vm199_vm2 = vcmask 518146  }
  0x10   :  { %79 = vst [vmem:[#allocation3] sm:$0x1] %v3349_v6  ;;  %v3014_v9 = vld [vmem:[%s3899_s0] sm:$0xff]  ;;  %v3015_v10 = vld [vmem:[%s3899_s0 + $0x8] sm:$0xff]  ;;  %vm205_vm3 = vcmask 519171   ;;  %v3039_v33 = vld [vmem:[%s3902_s3 + $0x78] sm:$0xff] }
  0x11   :  { %v3234_v11 = vld [vmem:[%s3901_s2] ss:$0 sm:$0xff]  ;;  %v3031_v35 = vld [vmem:[%s3902_s3 + $0x38] sm:$0xff]  ;;  %428 = vmatpush.bf16.msra.mxu2 %v3039_v33  ;;  %v3038_v36 = vld [vmem:[%s3902_s3 + $0x70] sm:$0xff]  ;;  %vm258_vm4 = vcmask 1046528   ;;  %s3350_s9 = smov 64  }
  0x12   :  { %165 = vmatpush.bf16.msra.mxu0 %v3022_v1  ;;  %414 = vmatpush.bf16.msra.mxu1 %v3031_v35  ;;  %v3030_v38 = vld [vmem:[%s3902_s3 + $0x30] sm:$0xff]  ;;  %v3037_v41 = vld [vmem:[%s3902_s3 + $0x68] sm:$0xff]  ;;  %v3036_v45 = vld [vmem:[%s3902_s3 + $0x60] sm:$0xff]  ;;  %vm273_vm5 = vcmask 523264   ;;  %s2175_s13 = sshll.u32 %s3910_s11, 4  ;;  %vm2158_vm6 = vcmask 1041408   ;;  %s2176_s13 = int_to_ptr.hbm [resolvable:$true] %s2175_s13 }
  0x13   :  { %v3029_v43 = vld [vmem:[%s3902_s3 + $0x28] sm:$0xff]  ;;  %v3028_v47 = vld [vmem:[%s3902_s3 + $0x20] sm:$0xff]  ;;  %v3035_v49 = vld [vmem:[%s3902_s3 + $0x58] sm:$0xff]  ;;  %s2186_s15 = sshll.u32 %s3911_s12, 4  ;;  %s2187_s15 = int_to_ptr.hbm [resolvable:$true] %s2186_s15 }
  0x14   :  { %v3027_v51 = vld [vmem:[%s3902_s3 + $0x18] sm:$0xff]  ;;  %v3034_v54 = vld [vmem:[%s3902_s3 + $0x50] sm:$0xff]  ;;  %v3033_v59 = vld [vmem:[%s3902_s3 + $0x48] sm:$0xff] }
  0x15   :  { %429 = vmatpush.bf16.msra.mxu2 %v3038_v36  ;;  %v3026_v57 = vld [vmem:[%s3902_s3 + $0x10] sm:$0xff]  ;;  %v3032_v61 = vld [vmem:[%s3902_s3 + $0x40] sm:$0xff]  ;;  %v3025_v62 = vld [vmem:[%s3902_s3 + $0x8] sm:$0xff] }
  0x16   :  { %166 = vmatpush.bf16.msra.mxu0 %v3021_v2  ;;  %415 = vmatpush.bf16.msra.mxu1 %v3030_v38  ;;  %v239_v44 = vld [vmem:[#allocation2 + $0x14] sm:$0x1]  ;;  %v3024_v63 = vld [vmem:[%s3902_s3] sm:$0xff]  ;;  %v2368_v0 = vld [vmem:[%s3904_s5 + $0x70] sm:$0xf] }
  0x17   :  { %v265_v46 = vunpack.c.l.b16 %v239_v44  ;;  %v3056_v1 = vld [vmem:[%s3904_s5 + $0x74] sm:$0xf0]  ;;  %v2432_v2 = vld [vmem:[%s3904_s5 + $0xf0] sm:$0xf]  ;;  %v3054_v6 = vld [vmem:[%s3904_s5 + $0x64] sm:$0xf0] }
  0x19   :  { %430 = vmatpush.bf16.msra.mxu2 %v3037_v41  ;;  %v267_v50 = vpack.c.b16 %v265_v46, %v265_v46  ;;  %v2336_v41 = vld [vmem:[%s3904_s5 + $0x30] sm:$0xf] }
  0x1a   :  { %167 = vmatpush.bf16.msra.mxu0 %v3020_v3  ;;  %416 = vmatpush.bf16.msra.mxu1 %v3029_v43  ;;  %v2369_v3 = vor.u32 %v3056_v1, %v2368_v0  ;;  %v2400_v43 = vld [vmem:[%s3904_s5 + $0xb0] sm:$0xf] }
  0x1b   :  { %v269_v56 = vrot.slane %v267_v50, 1  ;;  %v2496_v50 = vld [vmem:[%s3904_s5 + $0x170] sm:$0xf] }
  0x1c   :  { %771 = vmatpush.bf16.msra.mxu3 %v2369_v3  ;;  %v2320_v1 = vld [vmem:[%s3904_s5 + $0x10] sm:$0xf] }
  0x1d   :  { %431 = vmatpush.bf16.msra.mxu2 %v3036_v45  ;;  %v3064_v45 = vld [vmem:[%s3904_s5 + $0xb4] sm:$0xf0]  ;;  %v2384_v3 = vld [vmem:[%s3904_s5 + $0x90] sm:$0xf] }
  0x1e   :  { %168 = vmatpush.bf16.msra.mxu0 %v3019_v4  ;;  %417 = vmatpush.bf16.msra.mxu1 %v3028_v47  ;;  %v3072_v4 = vld [vmem:[%s3904_s5 + $0xf4] sm:$0xf0]  ;;  %v2401_v46 = vor.u32 %v3064_v45, %v2400_v43  ;;  %v3053_v47 = vld [vmem:[%s3904_s5 + $0x64] sm:$0xf]  ;;  %v3043_v43 = vld [vmem:[%s3904_s5 + $0x14] sm:$0xf] }
  0x1f   :  { %v3067_v45 = vld [vmem:[%s3904_s5 + $0xd4] sm:$0xf] }
  0x21   :  { %432 = vmatpush.bf16.msra.mxu2 %v3035_v49 }
  0x22   :  { %169 = vmatpush.bf16.msra.mxu0 %v3018_v5  ;;  %418 = vmatpush.bf16.msra.mxu1 %v3027_v51  ;;  %v2360_v5 = vld [vmem:[%s3904_s5 + $0x60] sm:$0xf]  ;;  %v3088_v51 = vld [vmem:[%s3904_s5 + $0x174] sm:$0xf0] }
  0x25   :  { %433 = vmatpush.bf16.msra.mxu2 %v3034_v54  ;;  %v3046_v54 = vld [vmem:[%s3904_s5 + $0x24] sm:$0xf0] }
  0x26   :  { %170 = vmatpush.bf16.msra.mxu0 %v3017_v7  ;;  %419 = vmatpush.bf16.msra.mxu1 %v3026_v57  ;;  %v2433_v7 = vor.u32 %v3072_v4, %v2432_v2  ;;  %v3062_v57 = vld [vmem:[%s3904_s5 + $0xa4] sm:$0xf0]  ;;  %v3044_v2 = vld [vmem:[%s3904_s5 + $0x14] sm:$0xf0] }
  0x27   :  { %v2321_v4 = vor.u32 %v3044_v2, %v2320_v1  ;;  %v3076_v1 = vld [vmem:[%s3904_s5 + $0x114] sm:$0xf0] }
  0x29   :  { %434 = vmatpush.bf16.msra.mxu2 %v3033_v59  ;;  %v2354_v59 = vld [vmem:[%s3904_s5 + $0x58] sm:$0xf0] }
  0x2a   :  { %171 = vmatpush.bf16.msra.mxu0 %v3016_v8  ;;  %420 = vmatpush.bf16.msra.mxu1 %v3025_v62  ;;  %v2424_v8 = vld [vmem:[%s3904_s5 + $0xe0] sm:$0xf] }
  0x2b   :  { %v2488_v62 = vld [vmem:[%s3904_s5 + $0x160] sm:$0xf] }
  0x2d   :  { %172 = vmatmul.bf16.vlgmr.msra.gmra.mxu0 %v3014_v9  ;;  %435 = vmatpush.bf16.msra.mxu2 %v3032_v61  ;;  %v3070_v9 = vld [vmem:[%s3904_s5 + $0xe4] sm:$0xf0] }
  0x2e   :  { %421 = vmatpush.bf16.msra.mxu1 %v3024_v63  ;;  %784 = vmatpush.bf16.msrb.mxu0 %v2433_v7  ;;  %v3086_v63 = vld [vmem:[%s3904_s5 + $0x164] sm:$0xf0]  ;;  %v3049_v7 = vld [vmem:[%s3904_s5 + $0x44] sm:$0xf] }
  0x2f   :  { %v2489_v0 = vor.u32 %v3086_v63, %v2488_v62 }
  0x3d   :  { %177 = vmatmul.bf16.gmra.mxu0 %v3015_v10  ;;  %v2361_v10 = vor.u32 %v3054_v6, %v2360_v5  ;;  %v3060_v5 = vld [vmem:[%s3904_s5 + $0x94] sm:$0xf0] }
  0x3e   :  { %v2385_v6 = vor.u32 %v3060_v5, %v2384_v3  ;;  %v3063_v3 = vld [vmem:[%s3904_s5 + $0xb4] sm:$0xf] }
  0x3f   :  { %772 = vmatpush.bf16.msra.mxu3 %v2361_v10  ;;  %v2480_v10 = vld [vmem:[%s3904_s5 + $0x150] sm:$0xf]  ;;  %v3079_v5 = vld [vmem:[%s3904_s5 + $0x134] sm:$0xf] }
  0xaa   :  { %v173_v12 = vpop.f32.mrf.mxu0 }
  0xab   :  { %v174_v13 = vadd.f32 %v3234_v11, %v173_v12  ;;  %v2352_v12 = vld [vmem:[%s3904_s5 + $0x50] sm:$0xf] }
  0xad   :  { %v183_v14 = vmax.f32 %v174_v13, 0.0  ;;  %v3052_v13 = vld [vmem:[%s3904_s5 + $0x54] sm:$0xf0] }
  0xaf   :  { %v187_v15 = vpack.c.bf16 %v183_v14, %v183_v14  ;;  %v2416_v14 = vld [vmem:[%s3904_s5 + $0xd0] sm:$0xf] }
  0xb1   :  { %191 = vst.msk [vmem:[#allocation2 + $0xc] sm:$0x1] %vm75_vm0, %v187_v15  ;;  %v195_v16 = vrot.slane %v187_v15, 5 }
  0xb2   :  { %193 = vst.msk [vmem:[#allocation2] sm:$0x2] %vm192_vm1, %v187_v15  ;;  %v175_v17 = vpop.f32.mrf.mxu0  ;;  %v3068_v15 = vld [vmem:[%s3904_s5 + $0xd4] sm:$0xf0] }
  0xb3   :  { %v196_v18 = vrot.slane %v195_v16, 4  ;;  %v176_v19 = vadd.f32 %v3234_v11, %v175_v17  ;;  %v3055_v16 = vld [vmem:[%s3904_s5 + $0x74] sm:$0xf]  ;;  %v2370_v17 = vld [vmem:[%s3904_s5 + $0x78] sm:$0xf0] }
  0xb5   :  { %198 = vst.msk [vmem:[#allocation2 + $0xc] sm:$0x2] %vm192_vm1, %v196_v18  ;;  %v184_v20 = vmax.f32 %v176_v19, 0.0 }
  0xb6   :  { %200 = vst.msk [vmem:[#allocation2] sm:$0x4] %vm199_vm2, %v196_v18  ;;  %v2373_v18 = vor.u32 %v3055_v16, %v2370_v17  ;;  %v3058_v17 = vld [vmem:[%s3904_s5 + $0x84] sm:$0xf0] }
  0xb7   :  { %v188_v21 = vpack.c.bf16 %v184_v20, %v184_v20  ;;  %v2353_v20 = vor.u32 %v3052_v13, %v2352_v12  ;;  %v2312_v13 = vld [vmem:[%s3904_s5] sm:$0xf] }
  0xb8   :  { %810 = vmatpush.bf16.msrb.mxu2 %v2373_v18  ;;  %v3047_v18 = vld [vmem:[%s3904_s5 + $0x34] sm:$0xf] }
  0xb9   :  { %v202_v22 = vrot.slane %v188_v21, 6  ;;  %v207_v23 = vrot.slane %v188_v21, 7  ;;  %v2417_v21 = vor.u32 %v3068_v15, %v2416_v14  ;;  %773 = vmatpush.bf16.msra.mxu3 %v2353_v20  ;;  %v3042_v14 = vld [vmem:[%s3904_s5 + $0x4] sm:$0xf0]  ;;  %v2376_v15 = vld [vmem:[%s3904_s5 + $0x80] sm:$0xf] }
  0xba   :  { %v178_v24 = vpop.f32.mrf.mxu0  ;;  %v2313_v16 = vor.u32 %v3042_v14, %v2312_v13  ;;  %v2377_v20 = vor.u32 %v3058_v17, %v2376_v15  ;;  %v2394_v14 = vld [vmem:[%s3904_s5 + $0xa8] sm:$0xf0]  ;;  %v3077_v15 = vld [vmem:[%s3904_s5 + $0x124] sm:$0xf] }
  0xbb   :  { %204 = vst.msk [vmem:[#allocation2 + $0xc] sm:$0x4] %vm199_vm2, %v202_v22  ;;  %v210_v25 = vrot.slane %v207_v23, 4  ;;  %v179_v26 = vadd.f32 %v3234_v11, %v178_v24  ;;  %v2408_v24 = vld [vmem:[%s3904_s5 + $0xc0] sm:$0xf] }
  0xbc   :  { %206 = vst.msk [vmem:[#allocation2] sm:$0x8] %vm205_vm3, %v202_v22  ;;  %v2344_v22 = vld [vmem:[%s3904_s5 + $0x40] sm:$0xf] }
  0xbd   :  { %209 = vst.msk [vmem:[#allocation2 + $0xc] sm:$0x8] %vm205_vm3, %v207_v23  ;;  %v185_v27 = vmax.f32 %v179_v26, 0.0  ;;  %v3050_v23 = vld [vmem:[%s3904_s5 + $0x44] sm:$0xf0] }
  0xbe   :  { %212 = vst.msk [vmem:[#allocation2 + $0x4] sm:$0x1] %vm75_vm0, %v210_v25  ;;  %v3066_v25 = vld [vmem:[%s3904_s5 + $0xc4] sm:$0xf0] }
  0xbf   :  { %v189_v28 = vpack.c.bf16 %v185_v27, %v185_v27  ;;  %v2345_v27 = vor.u32 %v3050_v23, %v2344_v22  ;;  %v3071_v22 = vld [vmem:[%s3904_s5 + $0xf4] sm:$0xf]  ;;  %v2434_v23 = vld [vmem:[%s3904_s5 + $0xf8] sm:$0xf0] }
  0xc1   :  { %213 = vst.msk [vmem:[#allocation2 + $0x10] sm:$0x1] %vm75_vm0, %v189_v28  ;;  %v216_v29 = vrot.slane %v189_v28, 5  ;;  %774 = vmatpush.bf16.msra.mxu3 %v2345_v27  ;;  %v2472_v27 = vld [vmem:[%s3904_s5 + $0x140] sm:$0xf] }
  0xc2   :  { %214 = vst.msk [vmem:[#allocation2 + $0x4] sm:$0x2] %vm192_vm1, %v189_v28  ;;  %v180_v30 = vpop.f32.mrf.mxu0  ;;  %v2409_v28 = vor.u32 %v3066_v25, %v2408_v24  ;;  %v3087_v24 = vld [vmem:[%s3904_s5 + $0x174] sm:$0xf]  ;;  %v2437_v25 = vor.u32 %v3071_v22, %v2434_v23  ;;  %v2386_v23 = vld [vmem:[%s3904_s5 + $0x98] sm:$0xf0] }
  0xc3   :  { %v217_v31 = vrot.slane %v216_v29, 4  ;;  %v181_v32 = vadd.f32 %v3234_v11, %v180_v30  ;;  %v2425_v11 = vor.u32 %v3070_v9, %v2424_v8  ;;  %v2346_v8 = vld [vmem:[%s3904_s5 + $0x48] sm:$0xf0]  ;;  %v3059_v22 = vld [vmem:[%s3904_s5 + $0x94] sm:$0xf] }
  0xc4   :  { %v3341_v48 = vld [vmem:[#allocation2 + $0xc] sm:$0xe]  ;;  %v2349_v9 = vor.u32 %v3049_v7, %v2346_v8  ;;  %v2466_v8 = vld [vmem:[%s3904_s5 + $0x138] sm:$0xf0] }
  0xc5   :  { %219 = vst.msk [vmem:[#allocation2 + $0x10] sm:$0x2] %vm192_vm1, %v217_v31  ;;  %v186_v34 = vmax.f32 %v181_v32, 0.0  ;;  %785 = vmatpush.bf16.msrb.mxu0 %v2425_v11  ;;  %v3084_v11 = vld [vmem:[%s3904_s5 + $0x154] sm:$0xf0] }
  0xc6   :  { %220 = vst.msk [vmem:[#allocation2 + $0x4] sm:$0x4] %vm199_vm2, %v217_v31  ;;  %v3222_v31 = vld [vmem:[#allocation2] sm:$0xe]  ;;  %v2481_v12 = vor.u32 %v3084_v11, %v2480_v10  ;;  %v3074_v11 = vld [vmem:[%s3904_s5 + $0x104] sm:$0xf0] }
  0xc7   :  { %v190_v37 = vpack.c.bf16 %v186_v34, %v186_v34  ;;  %v2440_v10 = vld [vmem:[%s3904_s5 + $0x100] sm:$0xf] }
  0xc8   :  { %v2441_v13 = vor.u32 %v3074_v11, %v2440_v10  ;;  %v2608_v10 = vld [vmem:[#allocation4 + $0xd0] sm:$0xf]  ;;  %v3116_v11 = vld [vmem:[#allocation4 + $0xd4] sm:$0xf0] }
  0xc9   :  { %v222_v39 = vrot.slane %v190_v37, 6  ;;  %v226_v40 = vrot.slane %v190_v37, 7  ;;  %786 = vmatpush.bf16.msrb.mxu0 %v2417_v21 }
  0xcb   :  { %224 = vst.msk [vmem:[#allocation2 + $0x10] sm:$0x4] %vm199_vm2, %v222_v39  ;;  %v229_v42 = vrot.slane %v226_v40, 4 }
  0xcc   :  { %225 = vst.msk [vmem:[#allocation2 + $0x4] sm:$0x8] %vm205_vm3, %v222_v39 }
  0xcd   :  { %228 = vst.msk [vmem:[#allocation2 + $0x10] sm:$0x8] %vm205_vm3, %v226_v40  ;;  %787 = vmatpush.bf16.msrb.mxu0 %v2409_v28  ;;  %v3082_v28 = vld [vmem:[%s3904_s5 + $0x144] sm:$0xf0] }
  0xce   :  { %231 = vst.msk [vmem:[#allocation2 + $0x8] sm:$0x1] %vm75_vm0, %v229_v42  ;;  %v3048_v42 = vld [vmem:[%s3904_s5 + $0x34] sm:$0xf0] }
  0xcf   :  { %v2337_v44 = vor.u32 %v3048_v42, %v2336_v41  ;;  %v3080_v41 = vld [vmem:[%s3904_s5 + $0x134] sm:$0xf0] }
  0xd1   :  { %775 = vmatpush.bf16.msra.mxu3 %v2337_v44  ;;  %788 = vmatpush.bf16.msrb.mxu0 %v2401_v46  ;;  %v2322_v44 = vld [vmem:[%s3904_s5 + $0x18] sm:$0xf0] }
  0xd2   :  { %v2325_v46 = vor.u32 %v3043_v43, %v2322_v44  ;;  %v2560_v44 = vld [vmem:[#allocation4 + $0x70] sm:$0xf] }
  0xd3   :  { %v3221_v29 = vld [vmem:[#allocation2] sm:$0xf0] }
  0xd4   :  { %v235_v52 = vld [vmem:[#allocation2 + $0xc] sm:$0xff]   ;;  %v3223_v32 = vor.u32 %v3222_v31, %v3221_v29  ;;  %v3218_v39 = vld [vmem:[#allocation2] sm:$0xff]  }
  0xd5   :  { %v3340_v53 = vld [vmem:[#allocation2 + $0xc] sm:$0xf0]  ;;  %v237_v19 = vld [vmem:[#allocation2 + $0x8] sm:$0x1]  ;;  %v3045_v31 = vld [vmem:[%s3904_s5 + $0x24] sm:$0xf] }
  0xd6   :  { %v3342_v55 = vor.u32 %v3341_v48, %v3340_v53  ;;  %v255_v26 = vunpack.c.l.b16 %v237_v19  ;;  %v259_v34 = vrot.slane %v3223_v32, 1  ;;  %v2362_v48 = vld [vmem:[%s3904_s5 + $0x68] sm:$0xf0]  ;;  %v2328_v53 = vld [vmem:[%s3904_s5 + $0x20] sm:$0xf] }
  0xd7   :  { %v2365_v49 = vor.u32 %v3053_v47, %v2362_v48  ;;  %v2338_v19 = vld [vmem:[%s3904_s5 + $0x38] sm:$0xf0]  ;;  %v2330_v32 = vld [vmem:[%s3904_s5 + $0x28] sm:$0xf0]  ;;  %v3083_v48 = vld [vmem:[%s3904_s5 + $0x154] sm:$0xf] }
  0xd8   :  { %v268_v58 = vrot.slane %v3342_v55, 1  ;;  %v257_v30 = vpack.c.b16 %v255_v26, %v255_v26  ;;  %v2392_v55 = vld [vmem:[%s3904_s5 + $0xa0] sm:$0xf]  ;;  %v2341_v21 = vor.u32 %v3047_v18, %v2338_v19  ;;  %v2498_v26 = vld [vmem:[%s3904_s5 + $0x178] sm:$0xf0] }
  0xd9   :  { %811 = vmatpush.bf16.msrb.mxu2 %v2365_v49  ;;  %v2501_v29 = vor.u32 %v3087_v24, %v2498_v26  ;;  %v2418_v47 = vld [vmem:[%s3904_s5 + $0xd8] sm:$0xf0]  ;;  %v3075_v24 = vld [vmem:[%s3904_s5 + $0x114] sm:$0xf]  ;;  %v2389_v26 = vor.u32 %v3059_v22, %v2386_v23  ;;  %v2672_v22 = vld [vmem:[#allocation4 + $0x150] sm:$0xf] }
  0xda   :  { %v270_v60 = vsel %vm258_vm4, %v268_v58, %v269_v56  ;;  %v260_v33 = vrot.slane %v257_v30, 1  ;;  %v2329_v56 = vor.u32 %v3046_v54, %v2328_v53  ;;  %v3051_v58 = vld [vmem:[%s3904_s5 + $0x54] sm:$0xf]  ;;  %v2473_v30 = vor.u32 %v3082_v28, %v2472_v27  ;;  %v2482_v49 = vld [vmem:[%s3904_s5 + $0x158] sm:$0xf0] }
  0xdb   :  { %271 = vrot.lane.b32.xlu0 %v270_v60, %s3350_s9  ;;  %v2393_v60 = vor.u32 %v3062_v57, %v2392_v55  ;;  %v2357_v61 = vor.u32 %v3051_v58, %v2354_v59  ;;  %v3078_v53 = vld [vmem:[%s3904_s5 + $0x124] sm:$0xf0]  ;;  %v3041_v55 = vld [vmem:[%s3904_s5 + $0x4] sm:$0xf]  ;;  %v2410_v59 = vld [vmem:[%s3904_s5 + $0xc8] sm:$0xf0] }
  0xdc   :  { %v261_v36 = vsel %vm258_vm4, %v259_v34, %v260_v33  ;;  %776 = vmatpush.bf16.msra.mxu3 %v2329_v56  ;;  %v3069_v33 = vld [vmem:[%s3904_s5 + $0xe4] sm:$0xf]  ;;  %v2333_v34 = vor.u32 %v3045_v31, %v2330_v32  ;;  %v2314_v56 = vld [vmem:[%s3904_s5 + $0x8] sm:$0xf0]  ;;  %v2450_v27 = vld [vmem:[%s3904_s5 + $0x118] sm:$0xf0] }
  0xdd   :  { %789 = vmatpush.bf16.msrb.mxu0 %v2393_v60  ;;  %812 = vmatpush.bf16.msrb.mxu2 %v2357_v61  ;;  %v3065_v57 = vld [vmem:[%s3904_s5 + $0xc4] sm:$0xf]  ;;  %v2317_v58 = vor.u32 %v3041_v55, %v2314_v56  ;;  %v2474_v61 = vld [vmem:[%s3904_s5 + $0x148] sm:$0xf0]  ;;  %v2453_v28 = vor.u32 %v3075_v24, %v2450_v27  ;;  %v2624_v56 = vld [vmem:[#allocation4 + $0xf0] sm:$0xf] }
  0xde   :  { %v3081_v60 = vld [vmem:[%s3904_s5 + $0x144] sm:$0xf]  ;;  %v2413_v62 = vor.u32 %v3065_v57, %v2410_v59  ;;  %v2688_v57 = vld [vmem:[#allocation4 + $0x170] sm:$0xf]  ;;  %v3136_v59 = vld [vmem:[#allocation4 + $0x174] sm:$0xf0] }
  0xdf   :  { %v2477_v63 = vor.u32 %v3081_v60, %v2474_v61  ;;  %v3073_v32 = vld [vmem:[%s3904_s5 + $0x104] sm:$0xf]  ;;  %v2536_v61 = vld [vmem:[#allocation4 + $0x40] sm:$0xf]  ;;  %v3132_v24 = vld [vmem:[#allocation4 + $0x154] sm:$0xf0] }
  0xe0   :  { %777 = vmatpush.bf16.msra.mxu3 %v2321_v4  ;;  %v2402_v4 = vld [vmem:[%s3904_s5 + $0xb8] sm:$0xf0]  ;;  %v3114_v27 = vld [vmem:[#allocation4 + $0xc4] sm:$0xf0] }
  0xe1   :  { %790 = vmatpush.bf16.msrb.mxu0 %v2385_v6  ;;  %813 = vmatpush.bf16.msrb.mxu2 %v2349_v9  ;;  %v3235_v6 = vld [vmem:[%s3903_s4] ss:$0 sm:$0xff]  ;;  %v2405_v7 = vor.u32 %v3063_v3, %v2402_v4  ;;  %v2469_v9 = vor.u32 %v3079_v5, %v2466_v8  ;;  %v3118_v3 = vld [vmem:[#allocation4 + $0xe4] sm:$0xf0]  ;;  %v2689_v5 = vor.u32 %v3136_v59, %v2688_v57  ;;  %v2576_v59 = vld [vmem:[#allocation4 + $0x90] sm:$0xf] }
  0xe2   :  { %s3351_s4 = smov [#allocation9]  }
  0xe3   :  { %250 = vrot.lane.b32.xlu0 %v235_v52, %s3350_s9  ;;  %v2497_v52 = vor.u32 %v3088_v51, %v2496_v50  ;;  %v2421_v50 = vor.u32 %v3067_v45, %v2418_v47  ;;  %v2485_v51 = vor.u32 %v3083_v48, %v2482_v49  ;;  %v3104_v45 = vld [vmem:[#allocation4 + $0x74] sm:$0xf0]  ;;  %v2552_v48 = vld [vmem:[#allocation4 + $0x60] sm:$0xf]  ;;  %v3102_v49 = vld [vmem:[#allocation4 + $0x64] sm:$0xf0] }
  0xe4   :  { %778 = vmatpush.bf16.msra.mxu3 %v2313_v16  ;;  %v2458_v16 = vld [vmem:[%s3904_s5 + $0x128] sm:$0xf0]  ;;  %v2561_v47 = vor.u32 %v3104_v45, %v2560_v44  ;;  %v2512_v45 = vld [vmem:[#allocation4 + $0x10] sm:$0xf]  ;;  %s2173_s28 = sshll.u32 %s3351_s4, 4  ;;  %s2174_s28 = int_to_ptr.vmem [resolvable:$true] %s2173_s28 }
  0xe5   :  { %797 = vmatpush.bf16.msrb.mxu1 %v2497_v52  ;;  %791 = vmatpush.bf16.msrb.mxu0 %v2377_v20  ;;  %v2456_v52 = vld [vmem:[%s3904_s5 + $0x120] sm:$0xf]  ;;  %v2461_v20 = vor.u32 %v3077_v15, %v2458_v16  ;;  %v2609_v15 = vor.u32 %v3116_v11, %v2608_v10  ;;  %v3166_v10 = vld [vmem:[#allocation4 + $0x264] sm:$0xf0]  ;;  %v2640_v11 = vld [vmem:[#allocation4 + $0x110] sm:$0xf] }
  0xe6   :  { %814 = vmatpush.bf16.msrb.mxu2 %v2341_v21  ;;  %v2457_v54 = vor.u32 %v3078_v53, %v2456_v52  ;;  %v2553_v52 = vor.u32 %v3102_v49, %v2552_v48  ;;  %v2544_v53 = vld [vmem:[#allocation4 + $0x50] sm:$0xf]  ;;  %v2584_v48 = vld [vmem:[#allocation4 + $0xa0] sm:$0xf]  ;;  %v3110_v49 = vld [vmem:[#allocation4 + $0xa4] sm:$0xf0] }
  0xe7   :  { %v2585_v57 = vor.u32 %v3110_v49, %v2584_v48  ;;  %v2784_v49 = vld [vmem:[#allocation4 + $0x230] sm:$0xf] }
  0xe8   :  { %823 = vmatpush.bf16.msrb.mxu3 %v2437_v25 }
  0xe9   :  { %798 = vmatpush.bf16.msrb.mxu1 %v2489_v0  ;;  %836 = vmatpush.bf16.msra.mxu0 %v2501_v29  ;;  %v2448_v0 = vld [vmem:[%s3904_s5 + $0x110] sm:$0xf]  ;;  %v3057_v29 = vld [vmem:[%s3904_s5 + $0x84] sm:$0xf] }
  0xea   :  { %815 = vmatpush.bf16.msrb.mxu2 %v2333_v34  ;;  %v2449_v2 = vor.u32 %v3076_v1, %v2448_v0  ;;  %v2752_v0 = vld [vmem:[#allocation4 + $0x1f0] sm:$0xf]  ;;  %v3152_v1 = vld [vmem:[#allocation4 + $0x1f4] sm:$0xf0] }
  0xed   :  { %799 = vmatpush.bf16.msrb.mxu1 %v2481_v12  ;;  %v3061_v12 = vld [vmem:[%s3904_s5 + $0xa4] sm:$0xf] }
  0xee   :  { %816 = vmatpush.bf16.msrb.mxu2 %v2325_v46  ;;  %v2397_v17 = vor.u32 %v3061_v12, %v2394_v14  ;;  %v3150_v14 = vld [vmem:[#allocation4 + $0x1e4] sm:$0xf0] }
  0xf1   :  { %800 = vmatpush.bf16.msrb.mxu1 %v2473_v30  ;;  %v2378_v30 = vld [vmem:[%s3904_s5 + $0x88] sm:$0xf0] }
  0xf2   :  { %817 = vmatpush.bf16.msrb.mxu2 %v2317_v58  ;;  %v3120_v58 = vld [vmem:[#allocation4 + $0xf4] sm:$0xf0] }
 0x14d   :  { %v272_v35 = vpop.permute.xlu0 %271 }
 0x14e   :  { %v280_v37 = vsel %vm273_vm5, %v261_v36, %v272_v35  ;;  %v2426_v35 = vld [vmem:[%s3904_s5 + $0xe8] sm:$0xf0]  ;;  %v3085_v36 = vld [vmem:[%s3904_s5 + $0x164] sm:$0xf] }
 0x14f   :  { %436 = vmatmul.bf16.vlgmr.msra.gmra.mxu2 %v280_v37  ;;  %v2490_v37 = vld [vmem:[%s3904_s5 + $0x168] sm:$0xf0] }
 0x155   :  { %v251_v38 = vpop.permute.xlu0 %250 }
 0x156   :  { %v276_v40 = vsel %vm273_vm5, %v3218_v39, %v251_v38  ;;  %v2429_v38 = vor.u32 %v3069_v33, %v2426_v35  ;;  %v2493_v39 = vor.u32 %v3085_v36, %v2490_v37  ;;  %v2442_v33 = vld [vmem:[%s3904_s5 + $0x108] sm:$0xf0]  ;;  %v2381_v35 = vor.u32 %v3057_v29, %v2378_v30  ;;  %v2736_v29 = vld [vmem:[#allocation4 + $0x1d0] sm:$0xf]  ;;  %v3148_v30 = vld [vmem:[#allocation4 + $0x1d4] sm:$0xf0] }
 0x157   :  { %422 = vmatmul.bf16.vlgmr.msra.gmra.mxu1 %v276_v40  ;;  %v2464_v40 = vld [vmem:[%s3904_s5 + $0x130] sm:$0xf]  ;;  %v2445_v37 = vor.u32 %v3073_v32, %v2442_v33  ;;  %v2520_v33 = vld [vmem:[#allocation4 + $0x20] sm:$0xf] }
 0x158   :  { %v2465_v42 = vor.u32 %v3080_v41, %v2464_v40  ;;  %824 = vmatpush.bf16.msrb.mxu3 %v2429_v38  ;;  %837 = vmatpush.bf16.msra.mxu0 %v2493_v39 }
 0x15a   :  { %801 = vmatpush.bf16.msrb.mxu1 %v2465_v42 }
 0x15c   :  { %825 = vmatpush.bf16.msrb.mxu3 %v2421_v50  ;;  %838 = vmatpush.bf16.msra.mxu0 %v2485_v51 }
 0x15e   :  { %802 = vmatpush.bf16.msrb.mxu1 %v2457_v54  ;;  %v3100_v54 = vld [vmem:[#allocation4 + $0x54] sm:$0xf0] }
 0x15f   :  { %v2545_v60 = vor.u32 %v3100_v54, %v2544_v53  ;;  %v2504_v54 = vld [vmem:[#allocation4] sm:$0xf] }
 0x160   :  { %826 = vmatpush.bf16.msrb.mxu3 %v2413_v62  ;;  %839 = vmatpush.bf16.msra.mxu0 %v2477_v63  ;;  %v2625_v62 = vor.u32 %v3120_v58, %v2624_v56  ;;  %v3098_v63 = vld [vmem:[#allocation4 + $0x44] sm:$0xf0]  ;;  %v3144_v56 = vld [vmem:[#allocation4 + $0x1b4] sm:$0xf0] }
 0x161   :  { %v2537_v8 = vor.u32 %v3098_v63, %v2536_v61  ;;  %v3090_v58 = vld [vmem:[#allocation4 + $0x4] sm:$0xf0]  ;;  %v3168_v63 = vld [vmem:[#allocation4 + $0x274] sm:$0xf0] }
 0x162   :  { %803 = vmatpush.bf16.msrb.mxu1 %v2449_v2  ;;  %1660 = vmatpush.bf16.msra.mxu2 %v2625_v62  ;;  %v2616_v2 = vld [vmem:[#allocation4 + $0xe0] sm:$0xf]  ;;  %v2816_v62 = vld [vmem:[#allocation4 + $0x270] sm:$0xf] }
 0x163   :  { %v2617_v4 = vor.u32 %v3118_v3, %v2616_v2  ;;  %v2505_v3 = vor.u32 %v3090_v58, %v2504_v54  ;;  %v2912_v58 = vld [vmem:[#allocation4 + $0x330] sm:$0xf] }
 0x164   :  { %827 = vmatpush.bf16.msrb.mxu3 %v2405_v7  ;;  %840 = vmatpush.bf16.msra.mxu0 %v2469_v9  ;;  %v3134_v7 = vld [vmem:[#allocation4 + $0x164] sm:$0xf0]  ;;  %v2753_v9 = vor.u32 %v3152_v1, %v2752_v0  ;;  %v2648_v0 = vld [vmem:[#allocation4 + $0x120] sm:$0xf] }
 0x165   :  { %v3126_v1 = vld [vmem:[#allocation4 + $0x124] sm:$0xf0] }
 0x166   :  { %804 = vmatpush.bf16.msrb.mxu1 %v2441_v13  ;;  %1661 = vmatpush.bf16.msra.mxu2 %v2617_v4  ;;  %v2744_v13 = vld [vmem:[#allocation4 + $0x1e0] sm:$0xf] }
 0x167   :  { %v2712_v4 = vld [vmem:[#allocation4 + $0x1a0] sm:$0xf] }
 0x168   :  { %828 = vmatpush.bf16.msrb.mxu3 %v2397_v17  ;;  %841 = vmatpush.bf16.msra.mxu0 %v2461_v20  ;;  %v2528_v17 = vld [vmem:[#allocation4 + $0x30] sm:$0xf] }
 0x16a   :  { %1647 = vmatpush.bf16.msra.mxu1 %v2561_v47  ;;  %1662 = vmatpush.bf16.msra.mxu2 %v2609_v15  ;;  %v3140_v15 = vld [vmem:[#allocation4 + $0x194] sm:$0xf0] }
 0x16c   :  { %829 = vmatpush.bf16.msrb.mxu3 %v2389_v26  ;;  %842 = vmatpush.bf16.msra.mxu0 %v2453_v28  ;;  %v2600_v26 = vld [vmem:[#allocation4 + $0xc0] sm:$0xf] }
 0x16e   :  { %1648 = vmatpush.bf16.msra.mxu1 %v2553_v52 }
 0x170   :  { %830 = vmatpush.bf16.msrb.mxu3 %v2381_v35  ;;  %843 = vmatpush.bf16.msra.mxu0 %v2445_v37  ;;  %v2673_v35 = vor.u32 %v3132_v24, %v2672_v22  ;;  %v2664_v37 = vld [vmem:[#allocation4 + $0x140] sm:$0xf]  ;;  %v3200_v24 = vld [vmem:[#allocation4 + $0x374] sm:$0xf0] }
 0x172   :  { %1649 = vmatpush.bf16.msra.mxu1 %v2545_v60  ;;  %v3108_v60 = vld [vmem:[#allocation4 + $0x94] sm:$0xf0] }
 0x176   :  { %1650 = vmatpush.bf16.msra.mxu1 %v2537_v8  ;;  %v2649_v8 = vor.u32 %v3126_v1, %v2648_v0  ;;  %v3000_v0 = vld [vmem:[#allocation4 + $0x3e0] sm:$0xf]  ;;  %v3214_v1 = vld [vmem:[#allocation4 + $0x3e4] sm:$0xf0] }
 0x1d2   :  { %v437_v18 = vpop.f32.mrf.mxu2 }
 0x1d4   :  { %v423_v19 = vpop.f32.mrf.mxu1 }
 0x1d5   :  { %v424_v21 = vadd.f32 %v3235_v6, %v423_v19 }
 0x1d7   :  { %v438_v25 = vadd.f32 %v437_v18, %v424_v21  ;;  %v3096_v18 = vld [vmem:[#allocation4 + $0x34] sm:$0xf0] }
 0x1d8   :  { %v2529_v28 = vor.u32 %v3096_v18, %v2528_v17 }
 0x1d9   :  { %v442_v31 = vmax.f32 %v438_v25, 0.0  ;;  %v2745_v25 = vor.u32 %v3150_v14, %v2744_v13  ;;  %v2704_v14 = vld [vmem:[#allocation4 + $0x190] sm:$0xf] }
 0x1da   :  { %v439_v40 = vpop.f32.mrf.mxu2  ;;  %1651 = vmatpush.bf16.msra.mxu1 %v2529_v28  ;;  %v2705_v22 = vor.u32 %v3140_v15, %v2704_v14  ;;  %v2936_v28 = vld [vmem:[#allocation4 + $0x360] sm:$0xf] }
 0x1db   :  { %v444_v34 = vpack.c.bf16 %v442_v31, %v442_v31  ;;  %v2601_v31 = vor.u32 %v3114_v27, %v2600_v26  ;;  %v2856_v15 = vld [vmem:[#allocation4 + $0x2c0] sm:$0xf] }
 0x1dc   :  { %v425_v36 = vpop.f32.mrf.mxu1 }
 0x1dd   :  { %447 = vst [vmem:[#allocation3 + $0x8] sm:$0x1] %v444_v34  ;;  %v450_v38 = vrot.slane %v444_v34, 5  ;;  %v426_v39 = vadd.f32 %v3235_v6, %v425_v36  ;;  %v2680_v6 = vld [vmem:[#allocation4 + $0x160] sm:$0xf]  ;;  %1663 = vmatpush.bf16.msra.mxu2 %v2601_v31 }
 0x1de   :  { %448 = vst [vmem:[#allocation3] sm:$0x2] %v444_v34  ;;  %v2681_v21 = vor.u32 %v3134_v7, %v2680_v6  ;;  %v3094_v34 = vld [vmem:[#allocation4 + $0x24] sm:$0xf0]  ;;  %v2592_v36 = vld [vmem:[#allocation4 + $0xb0] sm:$0xf]  ;;  %v2577_v6 = vor.u32 %v3108_v60, %v2576_v59  ;;  %v2817_v7 = vor.u32 %v3168_v63, %v2816_v62 }
 0x1df   :  { %v451_v41 = vrot.slane %v450_v38, 4  ;;  %v440_v42 = vadd.f32 %v439_v40, %v426_v39  ;;  %v3130_v38 = vld [vmem:[#allocation4 + $0x144] sm:$0xf0]  ;;  %v2737_v39 = vor.u32 %v3148_v30, %v2736_v29  ;;  %v3112_v40 = vld [vmem:[#allocation4 + $0xb4] sm:$0xf0] }
 0x1e0   :  { %v2593_v44 = vor.u32 %v3112_v40, %v2592_v36  ;;  %v2665_v47 = vor.u32 %v3130_v38, %v2664_v37  ;;  %v3198_v29 = vld [vmem:[#allocation4 + $0x364] sm:$0xf0]  ;;  %v2928_v31 = vld [vmem:[#allocation4 + $0x350] sm:$0xf]  ;;  %v2568_v37 = vld [vmem:[#allocation4 + $0x80] sm:$0xf] }
 0x1e1   :  { %453 = vst [vmem:[#allocation3 + $0x8] sm:$0x2] %v451_v41  ;;  %v443_v43 = vmax.f32 %v440_v42, 0.0  ;;  %v2728_v42 = vld [vmem:[#allocation4 + $0x1c0] sm:$0xf]  ;;  %v2937_v30 = vor.u32 %v3198_v29, %v2936_v28 }
 0x1e2   :  { %454 = vst [vmem:[#allocation3] sm:$0x4] %v451_v41  ;;  %v2521_v41 = vor.u32 %v3094_v34, %v2520_v33  ;;  %1664 = vmatpush.bf16.msra.mxu2 %v2593_v44  ;;  %v2792_v34 = vld [vmem:[#allocation4 + $0x240] sm:$0xf]  ;;  %v3106_v38 = vld [vmem:[#allocation4 + $0x84] sm:$0xf0] }
 0x1e3   :  { %v445_v46 = vpack.c.bf16 %v443_v43, %v443_v43  ;;  %v3146_v43 = vld [vmem:[#allocation4 + $0x1c4] sm:$0xf0]  ;;  %v2880_v40 = vld [vmem:[#allocation4 + $0x2f0] sm:$0xf]  ;;  %v3192_v59 = vld [vmem:[#allocation4 + $0x334] sm:$0xf0] }
 0x1e4   :  { %v2729_v52 = vor.u32 %v3146_v43, %v2728_v42  ;;  %1652 = vmatpush.bf16.msra.mxu1 %v2521_v41  ;;  %v3184_v41 = vld [vmem:[#allocation4 + $0x2f4] sm:$0xf0]  ;;  %v2920_v42 = vld [vmem:[#allocation4 + $0x340] sm:$0xf]  ;;  %v3194_v44 = vld [vmem:[#allocation4 + $0x344] sm:$0xf0]  ;;  %v2913_v60 = vor.u32 %v3192_v59, %v2912_v58 }
 0x1e5   :  { %v456_v50 = vrot.slane %v445_v46, 6  ;;  %v460_v51 = vrot.slane %v445_v46, 7  ;;  %v3092_v46 = vld [vmem:[#allocation4 + $0x14] sm:$0xf0]  ;;  %v2881_v43 = vor.u32 %v3184_v41, %v2880_v40  ;;  %v3158_v62 = vld [vmem:[#allocation4 + $0x224] sm:$0xf0] }
 0x1e6   :  { %v2513_v53 = vor.u32 %v3092_v46, %v2512_v45  ;;  %1665 = vmatpush.bf16.msra.mxu2 %v2585_v57  ;;  %v2696_v45 = vld [vmem:[#allocation4 + $0x180] sm:$0xf]  ;;  %v3138_v46 = vld [vmem:[#allocation4 + $0x184] sm:$0xf0]  ;;  %v3176_v28 = vld [vmem:[#allocation4 + $0x2b4] sm:$0xf0] }
 0x1e7   :  { %458 = vst [vmem:[#allocation3 + $0x8] sm:$0x4] %v456_v50  ;;  %v463_v55 = vrot.slane %v460_v51, 4  ;;  %v2697_v48 = vor.u32 %v3138_v46, %v2696_v45  ;;  %v2888_v29 = vld [vmem:[#allocation4 + $0x300] sm:$0xf] }
 0x1e8   :  { %459 = vst [vmem:[#allocation3] sm:$0x8] %v456_v50  ;;  %v2656_v50 = vld [vmem:[#allocation4 + $0x130] sm:$0xf]  ;;  %1653 = vmatpush.bf16.msra.mxu1 %v2513_v53  ;;  %v3216_v53 = vld [vmem:[#allocation4 + $0x3f4] sm:$0xf0] }
 0x1e9   :  { %462 = vst [vmem:[#allocation3 + $0x8] sm:$0x8] %v460_v51  ;;  %v3128_v51 = vld [vmem:[#allocation4 + $0x134] sm:$0xf0]  ;;  %v3206_v40 = vld [vmem:[#allocation4 + $0x3a4] sm:$0xf0] }
 0x1ea   :  { %465 = vst [vmem:[#allocation3 + $0x4] sm:$0x1] %v463_v55  ;;  %v2720_v55 = vld [vmem:[#allocation4 + $0x1b0] sm:$0xf]  ;;  %v2657_v61 = vor.u32 %v3128_v51, %v2656_v50  ;;  %1666 = vmatpush.bf16.msra.mxu2 %v2577_v6  ;;  %v3160_v50 = vld [vmem:[#allocation4 + $0x234] sm:$0xf0] }
 0x1eb   :  { %v2721_v2 = vor.u32 %v3144_v56, %v2720_v55  ;;  %v3008_v51 = vld [vmem:[#allocation4 + $0x3f0] sm:$0xf]  ;;  %v2872_v55 = vld [vmem:[#allocation4 + $0x2e0] sm:$0xf]  ;;  %v3182_v56 = vld [vmem:[#allocation4 + $0x2e4] sm:$0xf0] }
 0x1ec   :  { %1654 = vmatpush.bf16.msra.mxu1 %v2505_v3  ;;  %v3009_v54 = vor.u32 %v3216_v53, %v3008_v51  ;;  %v2873_v57 = vor.u32 %v3182_v56, %v2872_v55  ;;  %v2864_v3 = vld [vmem:[#allocation4 + $0x2d0] sm:$0xf]  ;;  %v3204_v46 = vld [vmem:[#allocation4 + $0x394] sm:$0xf0]  ;;  %v2952_v51 = vld [vmem:[#allocation4 + $0x380] sm:$0xf] }
 0x1ed   :  { %v2960_v45 = vld [vmem:[#allocation4 + $0x390] sm:$0xf] }
 0x1ef   :  { %v466_v12 = vld [vmem:[#allocation3] sm:$0xf] }
 0x1f0   :  { %779 = vmatmul.bf16.vlgmr.msra.gmra.mxu3 %v466_v12  ;;  %v3816_v16 = vld [vmem:[#allocation3 + $0x8] sm:$0xf]  ;;  %818 = vmatmul.bf16.vlgmr.msrb.gmra.mxu2 %v466_v12  ;;  %v2308_v19 = vld [vmem:[#allocation3] sm:$0xe] }
 0x1f1   :  { %792 = vmatmul.bf16.vlgmr.msrb.gmra.mxu0 %v3816_v16  ;;  %v3040_v20 = vld [vmem:[#allocation3] sm:$0x10]  ;;  %1673 = vmatpush.bf16.msra.mxu3 %v2689_v5  ;;  %v3142_v5 = vld [vmem:[#allocation4 + $0x1a4] sm:$0xf0]  ;;  %v3124_v12 = vld [vmem:[#allocation4 + $0x114] sm:$0xf0] }
 0x1f2   :  { %v2309_v23 = vor.u32 %v3040_v20, %v2308_v19  ;;  %1686 = vmatpush.bf16.msrb.mxu0 %v2753_v9  ;;  %v2808_v9 = vld [vmem:[#allocation4 + $0x260] sm:$0xf]  ;;  %v2713_v13 = vor.u32 %v3142_v5, %v2712_v4  ;;  %v2641_v18 = vor.u32 %v3124_v12, %v2640_v11  ;;  %v2800_v19 = vld [vmem:[#allocation4 + $0x250] sm:$0xf]  ;;  %v3180_v4 = vld [vmem:[#allocation4 + $0x2d4] sm:$0xf0] }
 0x1f3   :  { %v2809_v17 = vor.u32 %v3166_v10, %v2808_v9  ;;  %v2632_v20 = vld [vmem:[#allocation4 + $0x100] sm:$0xf]  ;;  %v2865_v6 = vor.u32 %v3180_v4, %v2864_v3  ;;  %v2768_v9 = vld [vmem:[#allocation4 + $0x210] sm:$0xf]  ;;  %v3156_v10 = vld [vmem:[#allocation4 + $0x214] sm:$0xf0] }
 0x1f4   :  { %v475_v32 = vrot.slane %v2309_v23, 1  ;;  %v2944_v23 = vld [vmem:[#allocation4 + $0x370] sm:$0xf]  ;;  %v2904_v5 = vld [vmem:[#allocation4 + $0x320] sm:$0xf]  ;;  %v2769_v12 = vor.u32 %v3156_v10, %v2768_v9 }
 0x1f5   :  { %1674 = vmatpush.bf16.msra.mxu3 %v2681_v21  ;;  %v3122_v21 = vld [vmem:[#allocation4 + $0x104] sm:$0xf0]  ;;  %v2945_v27 = vor.u32 %v3200_v24, %v2944_v23  ;;  %v2992_v11 = vld [vmem:[#allocation4 + $0x3d0] sm:$0xf]  ;;  %v2984_v23 = vld [vmem:[#allocation4 + $0x3c0] sm:$0xf] }
 0x1f6   :  { %805 = vmatmul.bf16.vlgmr.msrb.gmra.mxu1 %v475_v32  ;;  %1687 = vmatpush.bf16.msrb.mxu0 %v2745_v25  ;;  %v2633_v26 = vor.u32 %v3122_v21, %v2632_v20  ;;  %v2760_v21 = vld [vmem:[#allocation4 + $0x200] sm:$0xf]  ;;  %v3135_v3 = vld [vmem:[#allocation4 + $0x174] sm:$0xf]  ;;  %v2690_v4 = vld [vmem:[#allocation4 + $0x178] sm:$0xf0] }
 0x1f7   :  { %1699 = vmatpush.bf16.msrb.mxu1 %v2817_v7  ;;  %v3190_v7 = vld [vmem:[#allocation4 + $0x324] sm:$0xf0] }
 0x1f9   :  { %1675 = vmatpush.bf16.msra.mxu3 %v2673_v35  ;;  %v3162_v35 = vld [vmem:[#allocation4 + $0x244] sm:$0xf0] }
 0x1fa   :  { %1688 = vmatpush.bf16.msrb.mxu0 %v2737_v39  ;;  %v2793_v36 = vor.u32 %v3162_v35, %v2792_v34  ;;  %v2569_v39 = vor.u32 %v3106_v38, %v2568_v37  ;;  %v3208_v34 = vld [vmem:[#allocation4 + $0x3b4] sm:$0xf0]  ;;  %v3174_v37 = vld [vmem:[#allocation4 + $0x2a4] sm:$0xf0] }
 0x1fb   :  { %1700 = vmatpush.bf16.msrb.mxu1 %v2809_v17  ;;  %v3178_v17 = vld [vmem:[#allocation4 + $0x2c4] sm:$0xf0] }
 0x1fc   :  { %1667 = vmatpush.bf16.msra.mxu2 %v2569_v39  ;;  %v2968_v39 = vld [vmem:[#allocation4 + $0x3a0] sm:$0xf] }
 0x1fd   :  { %1676 = vmatpush.bf16.msra.mxu3 %v2665_v47  ;;  %v2921_v47 = vor.u32 %v3194_v44, %v2920_v42  ;;  %v2969_v41 = vor.u32 %v3206_v40, %v2968_v39  ;;  %v2832_v42 = vld [vmem:[#allocation4 + $0x290] sm:$0xf]  ;;  %v3095_v39 = vld [vmem:[#allocation4 + $0x34] sm:$0xf]  ;;  %v2530_v40 = vld [vmem:[#allocation4 + $0x38] sm:$0xf0] }
 0x1fe   :  { %1689 = vmatpush.bf16.msrb.mxu0 %v2729_v52  ;;  %v2785_v52 = vor.u32 %v3160_v50, %v2784_v49  ;;  %v3170_v49 = vld [vmem:[#allocation4 + $0x284] sm:$0xf0] }
 0x200   :  { %831 = vmatmul.bf16.vlgmr.msrb.gmra.mxu3 %v3816_v16  ;;  %v3164_v16 = vld [vmem:[#allocation4 + $0x254] sm:$0xf0]  ;;  %1712 = vmatpush.bf16.msrb.mxu2 %v2881_v43 }
 0x201   :  { %844 = vmatmul.bf16.vlgmr.msra.gmra.mxu0 %v475_v32  ;;  %1677 = vmatpush.bf16.msra.mxu3 %v2657_v61  ;;  %v2801_v25 = vor.u32 %v3164_v16, %v2800_v19  ;;  %v3196_v32 = vld [vmem:[#allocation4 + $0x354] sm:$0xf0]  ;;  %v2776_v61 = vld [vmem:[#allocation4 + $0x220] sm:$0xf]  ;;  %v2857_v19 = vor.u32 %v3178_v17, %v2856_v15 }
 0x202   :  { %1690 = vmatpush.bf16.msrb.mxu0 %v2721_v2  ;;  %v2929_v33 = vor.u32 %v3196_v32, %v2928_v31  ;;  %v2777_v63 = vor.u32 %v3158_v62, %v2776_v61  ;;  %v3001_v2 = vor.u32 %v3214_v1, %v3000_v0  ;;  %v3188_v16 = vld [vmem:[#allocation4 + $0x314] sm:$0xf0]  ;;  %v3186_v31 = vld [vmem:[#allocation4 + $0x304] sm:$0xf0]  ;;  %v3103_v0 = vld [vmem:[#allocation4 + $0x74] sm:$0xf] }
 0x203   :  { %1701 = vmatpush.bf16.msrb.mxu1 %v2801_v25  ;;  %v3210_v25 = vld [vmem:[#allocation4 + $0x3c4] sm:$0xf0]  ;;  %v2889_v32 = vor.u32 %v3186_v31, %v2888_v29  ;;  %v3172_v43 = vld [vmem:[#allocation4 + $0x294] sm:$0xf0]  ;;  %v2562_v1 = vld [vmem:[#allocation4 + $0x78] sm:$0xf0] }
 0x204   :  { %1713 = vmatpush.bf16.msrb.mxu2 %v2873_v57  ;;  %v2833_v44 = vor.u32 %v3172_v43, %v2832_v42  ;;  %v3097_v29 = vld [vmem:[#allocation4 + $0x44] sm:$0xf]  ;;  %v3151_v43 = vld [vmem:[#allocation4 + $0x1f4] sm:$0xf] }
 0x205   :  { %1678 = vmatpush.bf16.msra.mxu3 %v2649_v8  ;;  %v2905_v8 = vor.u32 %v3190_v7, %v2904_v5  ;;  %v2565_v7 = vor.u32 %v3103_v0, %v2562_v1  ;;  %v3115_v1 = vld [vmem:[#allocation4 + $0xd4] sm:$0xf] }
 0x206   :  { %1691 = vmatpush.bf16.msrb.mxu0 %v2713_v13  ;;  %v3212_v13 = vld [vmem:[#allocation4 + $0x3d4] sm:$0xf0] }
 0x207   :  { %1702 = vmatpush.bf16.msrb.mxu1 %v2793_v36  ;;  %v2993_v14 = vor.u32 %v3212_v13, %v2992_v11  ;;  %v2840_v36 = vld [vmem:[#allocation4 + $0x2a0] sm:$0xf]  ;;  %v3101_v11 = vld [vmem:[#allocation4 + $0x64] sm:$0xf]  ;;  %v2693_v13 = vor.u32 %v3135_v3, %v2690_v4  ;;  %v2610_v3 = vld [vmem:[#allocation4 + $0xd8] sm:$0xf0] }
 0x208   :  { %1714 = vmatpush.bf16.msrb.mxu2 %v2865_v6  ;;  %v2841_v38 = vor.u32 %v3174_v37, %v2840_v36  ;;  %v3129_v36 = vld [vmem:[#allocation4 + $0x144] sm:$0xf]  ;;  %v2666_v37 = vld [vmem:[#allocation4 + $0x148] sm:$0xf0] }
 0x209   :  { %1679 = vmatpush.bf16.msra.mxu3 %v2641_v18  ;;  %v2896_v18 = vld [vmem:[#allocation4 + $0x310] sm:$0xf]  ;;  %v3125_v4 = vld [vmem:[#allocation4 + $0x124] sm:$0xf] }
 0x20a   :  { %1692 = vmatpush.bf16.msrb.mxu0 %v2705_v22  ;;  %v2897_v20 = vor.u32 %v3188_v16, %v2896_v18  ;;  %v3154_v22 = vld [vmem:[#allocation4 + $0x204] sm:$0xf0]  ;;  %v3133_v18 = vld [vmem:[#allocation4 + $0x164] sm:$0xf] }
 0x20b   :  { %1703 = vmatpush.bf16.msrb.mxu1 %v2785_v52  ;;  %v2761_v24 = vor.u32 %v3154_v22, %v2760_v21  ;;  %v3202_v52 = vld [vmem:[#allocation4 + $0x384] sm:$0xf0]  ;;  %v2546_v21 = vld [vmem:[#allocation4 + $0x58] sm:$0xf0] }
 0x20c   :  { %1715 = vmatpush.bf16.msrb.mxu2 %v2857_v19  ;;  %v2953_v53 = vor.u32 %v3202_v52, %v2952_v51  ;;  %v2682_v19 = vld [vmem:[#allocation4 + $0x168] sm:$0xf0]  ;;  %v3127_v52 = vld [vmem:[#allocation4 + $0x134] sm:$0xf] }
 0x20d   :  { %1680 = vmatpush.bf16.msra.mxu3 %v2633_v26  ;;  %v2985_v26 = vor.u32 %v3210_v25, %v2984_v23  ;;  %v2685_v22 = vor.u32 %v3133_v18, %v2682_v19  ;;  %v2674_v25 = vld [vmem:[#allocation4 + $0x158] sm:$0xf0]  ;;  %v2602_v18 = vld [vmem:[#allocation4 + $0xc8] sm:$0xf0]  ;;  %v3123_v19 = vld [vmem:[#allocation4 + $0x114] sm:$0xf] }
 0x20e   :  { %1693 = vmatpush.bf16.msrb.mxu0 %v2697_v48  ;;  %v2824_v48 = vld [vmem:[#allocation4 + $0x280] sm:$0xf] }
 0x20f   :  { %1704 = vmatpush.bf16.msrb.mxu1 %v2777_v63  ;;  %v2825_v50 = vor.u32 %v3170_v49, %v2824_v48  ;;  %v2618_v48 = vld [vmem:[#allocation4 + $0xe8] sm:$0xf0] }
 0x211   :  { %1725 = vmatpush.bf16.msrb.mxu3 %v2945_v27  ;;  %v2848_v27 = vld [vmem:[#allocation4 + $0x2b0] sm:$0xf] }
 0x212   :  { %1738 = vmatpush.bf16.msra.mxu0 %v3009_v54  ;;  %v525_v54 = vld [vmem:[%s3905_s6] sm:$0x3] }
 0x213   :  { %1705 = vmatpush.bf16.msrb.mxu1 %v2769_v12  ;;  %v527_v56 = vperm.slane %v525_v54, 0  ;;  %v2554_v12 = vld [vmem:[#allocation4 + $0x68] sm:$0xf0] }
 0x214   :  { %v2557_v16 = vor.u32 %v3101_v11, %v2554_v12  ;;  %v3147_v11 = vld [vmem:[#allocation4 + $0x1d4] sm:$0xf]  ;;  %v2738_v12 = vld [vmem:[#allocation4 + $0x1d8] sm:$0xf0] }
 0x215   :  { %1726 = vmatpush.bf16.msrb.mxu3 %v2937_v30  ;;  %v2849_v30 = vor.u32 %v3176_v28, %v2848_v27 }
 0x216   :  { %1739 = vmatpush.bf16.msra.mxu0 %v3001_v2 }
 0x217   :  { %1706 = vmatpush.bf16.msrb.mxu1 %v2761_v24  ;;  %1716 = vmatpush.bf16.msrb.mxu2 %v2849_v30  ;;  %v3131_v24 = vld [vmem:[#allocation4 + $0x154] sm:$0xf]  ;;  %v2538_v30 = vld [vmem:[#allocation4 + $0x48] sm:$0xf0] }
 0x218   :  { %v2677_v31 = vor.u32 %v3131_v24, %v2674_v25  ;;  %v3145_v24 = vld [vmem:[#allocation4 + $0x1c4] sm:$0xf]  ;;  %v2730_v25 = vld [vmem:[#allocation4 + $0x1c8] sm:$0xf0] }
 0x219   :  { %1727 = vmatpush.bf16.msrb.mxu3 %v2929_v33  ;;  %v2976_v33 = vld [vmem:[#allocation4 + $0x3b0] sm:$0xf] }
 0x21a   :  { %1740 = vmatpush.bf16.msra.mxu0 %v2993_v14  ;;  %v2977_v35 = vor.u32 %v3208_v34, %v2976_v33  ;;  %v528_v14 = vperm.slane %v525_v54, 1 }
 0x21b   :  { %1717 = vmatpush.bf16.msrb.mxu2 %v2841_v38  ;;  %v2541_v38 = vor.u32 %v3097_v29, %v2538_v30  ;;  %v2818_v29 = vld [vmem:[#allocation4 + $0x278] sm:$0xf0]  ;;  %v3111_v30 = vld [vmem:[#allocation4 + $0xb4] sm:$0xf] }
 0x21d   :  { %1728 = vmatpush.bf16.msrb.mxu3 %v2921_v47  ;;  %v2961_v47 = vor.u32 %v3204_v46, %v2960_v45  ;;  %v2669_v46 = vor.u32 %v3129_v36, %v2666_v37  ;;  %v2733_v36 = vor.u32 %v3145_v24, %v2730_v25  ;;  %v3199_v37 = vld [vmem:[#allocation4 + $0x374] sm:$0xf] }
 0x21e   :  { %1741 = vmatpush.bf16.msra.mxu0 %v2985_v26  ;;  %v3159_v24 = vld [vmem:[#allocation4 + $0x234] sm:$0xf] }
 0x21f   :  { %1718 = vmatpush.bf16.msrb.mxu2 %v2833_v44  ;;  %v2754_v44 = vld [vmem:[#allocation4 + $0x1f8] sm:$0xf0] }
 0x221   :  { %1729 = vmatpush.bf16.msrb.mxu3 %v2913_v60 }
 0x222   :  { %1742 = vmatpush.bf16.msra.mxu0 %v2977_v35  ;;  %v2626_v35 = vld [vmem:[#allocation4 + $0xf8] sm:$0xf0] }
 0x223   :  { %1719 = vmatpush.bf16.msrb.mxu2 %v2825_v50 }
 0x225   :  { %1730 = vmatpush.bf16.msrb.mxu3 %v2905_v8 }
 0x226   :  { %1743 = vmatpush.bf16.msra.mxu0 %v2969_v41 }
 0x229   :  { %1731 = vmatpush.bf16.msrb.mxu3 %v2897_v20  ;;  %v3099_v20 = vld [vmem:[#allocation4 + $0x54] sm:$0xf] }
 0x22a   :  { %1744 = vmatpush.bf16.msra.mxu0 %v2961_v47  ;;  %v2549_v27 = vor.u32 %v3099_v20, %v2546_v21  ;;  %v3117_v47 = vld [vmem:[#allocation4 + $0xe4] sm:$0xf]  ;;  %v2741_v21 = vor.u32 %v3147_v11, %v2738_v12 }
 0x22b   :  { %v3161_v12 = vld [vmem:[#allocation4 + $0x244] sm:$0xf] }
 0x22d   :  { %1732 = vmatpush.bf16.msrb.mxu3 %v2889_v32  ;;  %v3119_v32 = vld [vmem:[#allocation4 + $0xf4] sm:$0xf] }
 0x22e   :  { %1745 = vmatpush.bf16.msra.mxu0 %v2953_v53  ;;  %v2629_v45 = vor.u32 %v3119_v32, %v2626_v35  ;;  %v2658_v53 = vld [vmem:[#allocation4 + $0x138] sm:$0xf0] }
 0x22f   :  { %v2661_v0 = vor.u32 %v3127_v52, %v2658_v53  ;;  %v2586_v52 = vld [vmem:[#allocation4 + $0xa8] sm:$0xf0] }
 0x26e   :  { %v793_v55 = vpop.f32.mrf.mxu0 }
 0x273   :  { %v780_v57 = vpop.f32.mrf.mxu3  ;;  %v806_v58 = vpop.f32.mrf.mxu1 }
 0x274   :  { %v781_v59 = vadd.f32 %v780_v57, %v527_v56  ;;  %v819_v60 = vpop.f32.mrf.mxu2  ;;  %v2757_v56 = vor.u32 %v3151_v43, %v2754_v44  ;;  %v3093_v57 = vld [vmem:[#allocation4 + $0x24] sm:$0xf]  ;;  %v2722_v43 = vld [vmem:[#allocation4 + $0x1b8] sm:$0xf0] }
 0x275   :  { %v820_v23 = vadd.f32 %v819_v60, %v528_v14  ;;  %v2522_v60 = vld [vmem:[#allocation4 + $0x28] sm:$0xf0] }
 0x276   :  { %v794_v61 = vadd.f32 %v793_v55, %v781_v59  ;;  %v795_v62 = vpop.f32.mrf.mxu0  ;;  %v2533_v55 = vor.u32 %v3095_v39, %v2530_v40 }
 0x277   :  { %v2746_v62 = vld [vmem:[#allocation4 + $0x1e8] sm:$0xf0] }
 0x278   :  { %v807_v63 = vadd.f32 %v806_v58, %v794_v61  ;;  %v3149_v61 = vld [vmem:[#allocation4 + $0x1e4] sm:$0xf] }
 0x27a   :  { %v3823_v2 = vmax.f32 %v807_v63, 0.0  ;;  %v2621_v63 = vor.u32 %v3117_v47, %v2618_v48  ;;  %v2810_v47 = vld [vmem:[#allocation4 + $0x268] sm:$0xf0] }
 0x27b   :  { %v782_v5 = vpop.f32.mrf.mxu3  ;;  %v808_v6 = vpop.f32.mrf.mxu1 }
 0x27c   :  { %v821_v8 = vpop.f32.mrf.mxu2  ;;  %v3827_v9 = vpack.c.bf16 %v3823_v2, %v3823_v2  ;;  %v853_v10 = vrot.slane %v3823_v2, 2  ;;  %v857_v42 = vrot.slane %v3823_v2, 4  ;;  %v861_v51 = vrot.slane %v3823_v2, 6  ;;  %v2650_v5 = vld [vmem:[#allocation4 + $0x128] sm:$0xf0] }
 0x27d   :  { %v2525_v6 = vor.u32 %v3093_v57, %v2522_v60  ;;  %v3091_v8 = vld [vmem:[#allocation4 + $0x14] sm:$0xf]  ;;  %v2653_v14 = vor.u32 %v3125_v4, %v2650_v5  ;;  %v3141_v57 = vld [vmem:[#allocation4 + $0x1a4] sm:$0xf]  ;;  %v2714_v60 = vld [vmem:[#allocation4 + $0x1a8] sm:$0xf0] }
 0x27e   :  { %v845_v15 = vpop.f32.mrf.mxu0  ;;  %1655 = vmatmul.bf16.vlgmr.msra.gmra.mxu1 %v3827_v9  ;;  %v3831_v17 = vpack.c.bf16 %v853_v10, %v853_v10  ;;  %v3846_v59 = vpack.c.bf16 %v857_v42, %v857_v42  ;;  %v3850_v2 = vpack.c.bf16 %v861_v51, %v861_v51  ;;  %v2514_v10 = vld [vmem:[#allocation4 + $0x18] sm:$0xf0]  ;;  %v3143_v42 = vld [vmem:[#allocation4 + $0x1b4] sm:$0xf]  ;;  %v3109_v51 = vld [vmem:[#allocation4 + $0xa4] sm:$0xf]  ;;  %v2717_v4 = vor.u32 %v3141_v57, %v2714_v60 }
 0x27f   :  { %1751 = vmatpush.bf16.msra.mxu1 %v2565_v7  ;;  %v2749_v7 = vor.u32 %v3149_v61, %v2746_v62  ;;  %v2517_v20 = vor.u32 %v3091_v8, %v2514_v10  ;;  %v2725_v53 = vor.u32 %v3143_v42, %v2722_v43  ;;  %v2589_v61 = vor.u32 %v3109_v51, %v2586_v52  ;;  %v3163_v62 = vld [vmem:[#allocation4 + $0x254] sm:$0xf]  ;;  %v2706_v10 = vld [vmem:[#allocation4 + $0x198] sm:$0xf0]  ;;  %v3002_v42 = vld [vmem:[#allocation4 + $0x3e8] sm:$0xf0] }
 0x280   :  { %1681 = vmatmul.bf16.vlgmr.msra.gmra.mxu3 %v3831_v17  ;;  %v3195_v5 = vld [vmem:[#allocation4 + $0x354] sm:$0xf] }
 0x281   :  { %1777 = vmatpush.bf16.msra.mxu3 %v2693_v13  ;;  %v2613_v13 = vor.u32 %v3115_v1, %v2610_v3  ;;  %v3107_v1 = vld [vmem:[#allocation4 + $0x94] sm:$0xf]  ;;  %v2578_v3 = vld [vmem:[#allocation4 + $0x98] sm:$0xf0] }
 0x282   :  { %v3139_v8 = vld [vmem:[#allocation4 + $0x194] sm:$0xf]  ;;  %v2581_v11 = vor.u32 %v3107_v1, %v2578_v3 }
 0x283   :  { %1752 = vmatpush.bf16.msra.mxu1 %v2557_v16  ;;  %v832_v26 = vpop.f32.mrf.mxu3  ;;  %v2642_v16 = vld [vmem:[#allocation4 + $0x118] sm:$0xf0] }
 0x284   :  { %v833_v28 = vadd.f32 %v832_v26, %v820_v23  ;;  %v2506_v23 = vld [vmem:[#allocation4 + $0x8] sm:$0xf0]  ;;  %v3167_v26 = vld [vmem:[#allocation4 + $0x274] sm:$0xf] }
 0x285   :  { %1778 = vmatpush.bf16.msra.mxu3 %v2685_v22  ;;  %v3089_v22 = vld [vmem:[#allocation4 + $0x4] sm:$0xf]  ;;  %v2821_v39 = vor.u32 %v3167_v26, %v2818_v29  ;;  %v2786_v26 = vld [vmem:[#allocation4 + $0x238] sm:$0xf0] }
 0x286   :  { %v846_v33 = vadd.f32 %v845_v15, %v833_v28  ;;  %v847_v34 = vpop.f32.mrf.mxu0  ;;  %v3113_v15 = vld [vmem:[#allocation4 + $0xc4] sm:$0xf]  ;;  %v2645_v28 = vor.u32 %v3123_v19, %v2642_v16  ;;  %v2509_v35 = vor.u32 %v3089_v22, %v2506_v23  ;;  %v3183_v19 = vld [vmem:[#allocation4 + $0x2f4] sm:$0xf]  ;;  %v2882_v16 = vld [vmem:[#allocation4 + $0x2f8] sm:$0xf0] }
 0x287   :  { %1753 = vmatpush.bf16.msra.mxu1 %v2549_v27  ;;  %v2605_v27 = vor.u32 %v3113_v15, %v2602_v18  ;;  %v2634_v34 = vld [vmem:[#allocation4 + $0x108] sm:$0xf0]  ;;  %v3105_v15 = vld [vmem:[#allocation4 + $0x84] sm:$0xf]  ;;  %v2885_v29 = vor.u32 %v3183_v19, %v2882_v16 }
 0x288   :  { %v3834_v41 = vmax.f32 %v846_v33, 0.0  ;;  %v3121_v33 = vld [vmem:[#allocation4 + $0x104] sm:$0xf]  ;;  %v2570_v18 = vld [vmem:[#allocation4 + $0x88] sm:$0xf0] }
 0x289   :  { %1779 = vmatpush.bf16.msra.mxu3 %v2677_v31  ;;  %v2594_v31 = vld [vmem:[#allocation4 + $0xb8] sm:$0xf0]  ;;  %v2698_v23 = vld [vmem:[#allocation4 + $0x188] sm:$0xf0]  ;;  %v2573_v25 = vor.u32 %v3105_v15, %v2570_v18  ;;  %v3207_v15 = vld [vmem:[#allocation4 + $0x3b4] sm:$0xf] }
 0x28a   :  { %v3839_v49 = vpack.c.bf16 %v3834_v41, %v3834_v41  ;;  %v854_v50 = vrot.slane %v3834_v41, 2  ;;  %v858_v32 = vrot.slane %v3834_v41, 4  ;;  %v862_v40 = vrot.slane %v3834_v41, 6  ;;  %v2978_v18 = vld [vmem:[#allocation4 + $0x3b8] sm:$0xf0]  ;;  %v1917_v16 = vld [vmem:[#allocation7 + $0x1e0] sm:$0xff] }
 0x28b   :  { %1754 = vmatpush.bf16.msra.mxu1 %v2541_v38  ;;  %v834_v54 = vpop.f32.mrf.mxu3  ;;  %v2946_v38 = vld [vmem:[#allocation4 + $0x378] sm:$0xf0]  ;;  %v2597_v44 = vor.u32 %v3111_v30, %v2594_v31  ;;  %v3181_v31 = vld [vmem:[#allocation4 + $0x2e4] sm:$0xf] }
 0x28c   :  { %1668 = vmatmul.bf16.vlgmr.msra.gmra.mxu2 %v3839_v49  ;;  %v3844_v58 = vpack.c.bf16 %v854_v50, %v854_v50  ;;  %v3855_v48 = vpack.c.bf16 %v858_v32, %v858_v32  ;;  %v2949_v50 = vor.u32 %v3199_v37, %v2946_v38  ;;  %v3197_v54 = vld [vmem:[#allocation4 + $0x364] sm:$0xf]  ;;  %v3858_v41 = vpack.c.bf16 %v862_v40, %v862_v40 }
 0x28d   :  { %1764 = vmatpush.bf16.msra.mxu2 %v2629_v45  ;;  %1780 = vmatpush.bf16.msra.mxu3 %v2669_v46  ;;  %v2637_v45 = vor.u32 %v3121_v33, %v2634_v34  ;;  %v3165_v46 = vld [vmem:[#allocation4 + $0x264] sm:$0xf]  ;;  %v2874_v33 = vld [vmem:[#allocation4 + $0x2e8] sm:$0xf0]  ;;  %v3191_v34 = vld [vmem:[#allocation4 + $0x334] sm:$0xf] }
 0x28e   :  { %1694 = vmatmul.bf16.vlgmr.msrb.gmra.mxu0 %v3844_v58  ;;  %1707 = vmatmul.bf16.vlgmr.msrb.gmra.mxu1 %v3846_v59  ;;  %v3157_v38 = vld [vmem:[#allocation4 + $0x224] sm:$0xf]  ;;  %v2877_v43 = vor.u32 %v3181_v31, %v2874_v33  ;;  %v2962_v33 = vld [vmem:[#allocation4 + $0x398] sm:$0xf0] }
 0x28f   :  { %1755 = vmatpush.bf16.msra.mxu1 %v2533_v55  ;;  %1790 = vmatpush.bf16.msrb.mxu0 %v2757_v56  ;;  %v2938_v55 = vld [vmem:[#allocation4 + $0x368] sm:$0xf0]  ;;  %v2813_v56 = vor.u32 %v3165_v46, %v2810_v47  ;;  %v3213_v40 = vld [vmem:[#allocation4 + $0x3e4] sm:$0xf]  ;;  %v2866_v46 = vld [vmem:[#allocation4 + $0x2d8] sm:$0xf0] }
 0x290   :  { %1733 = vmatmul.bf16.vlgmr.msrb.gmra.mxu3 %v3850_v2  ;;  %v3189_v47 = vld [vmem:[#allocation4 + $0x324] sm:$0xf]  ;;  %v3005_v52 = vor.u32 %v3213_v40, %v3002_v42 }
 0x291   :  { %1765 = vmatpush.bf16.msra.mxu2 %v2621_v63  ;;  %1781 = vmatpush.bf16.msra.mxu3 %v2661_v0  ;;  %v2802_v63 = vld [vmem:[#allocation4 + $0x258] sm:$0xf0]  ;;  %v2941_v0 = vor.u32 %v3197_v54, %v2938_v55  ;;  %v3211_v55 = vld [vmem:[#allocation4 + $0x3d4] sm:$0xf]  ;;  %v1909_v31 = vld [vmem:[#allocation7 + $0x1a0] sm:$0xff] }
 0x292   :  { %v2770_v54 = vld [vmem:[#allocation4 + $0x218] sm:$0xf0]  ;;  %v1901_v40 = vld [vmem:[#allocation7 + $0x160] sm:$0xff] }
 0x293   :  { %1756 = vmatpush.bf16.msra.mxu1 %v2525_v6  ;;  %1791 = vmatpush.bf16.msrb.mxu0 %v2749_v7  ;;  %v2930_v6 = vld [vmem:[#allocation4 + $0x358] sm:$0xf0]  ;;  %v2805_v7 = vor.u32 %v3163_v62, %v2802_v63  ;;  %v2858_v62 = vld [vmem:[#allocation4 + $0x2c8] sm:$0xf0]  ;;  %v3187_v63 = vld [vmem:[#allocation4 + $0x314] sm:$0xf] }
 0x294   :  { %v3201_v42 = vld [vmem:[#allocation4 + $0x384] sm:$0xf] }
 0x295   :  { %1766 = vmatpush.bf16.msra.mxu2 %v2613_v13  ;;  %1782 = vmatpush.bf16.msra.mxu3 %v2653_v14  ;;  %v2794_v13 = vld [vmem:[#allocation4 + $0x248] sm:$0xf0]  ;;  %v2933_v14 = vor.u32 %v3195_v5, %v2930_v6 }
 0x296   :  { %v2797_v22 = vor.u32 %v3161_v12, %v2794_v13  ;;  %v2762_v5 = vld [vmem:[#allocation4 + $0x208] sm:$0xf0]  ;;  %v3185_v12 = vld [vmem:[#allocation4 + $0x304] sm:$0xf] }
 0x297   :  { %1757 = vmatpush.bf16.msra.mxu1 %v2517_v20  ;;  %1792 = vmatpush.bf16.msrb.mxu0 %v2741_v21  ;;  %v3193_v20 = vld [vmem:[#allocation4 + $0x344] sm:$0xf]  ;;  %v2922_v21 = vld [vmem:[#allocation4 + $0x348] sm:$0xf0] }
 0x298   :  { %v2925_v30 = vor.u32 %v3193_v20, %v2922_v21  ;;  %v2986_v6 = vld [vmem:[#allocation4 + $0x3c8] sm:$0xf0]  ;;  %v3173_v20 = vld [vmem:[#allocation4 + $0x2a4] sm:$0xf] }
 0x299   :  { %1767 = vmatpush.bf16.msra.mxu2 %v2605_v27  ;;  %1783 = vmatpush.bf16.msra.mxu3 %v2645_v28  ;;  %v3215_v27 = vld [vmem:[#allocation4 + $0x3f4] sm:$0xf]  ;;  %v3010_v28 = vld [vmem:[#allocation4 + $0x3f8] sm:$0xf0]  ;;  %v2890_v13 = vld [vmem:[#allocation4 + $0x308] sm:$0xf0] }
 0x29a   :  { %v3013_v37 = vor.u32 %v3215_v27, %v3010_v28  ;;  %v2842_v21 = vld [vmem:[#allocation4 + $0x2a8] sm:$0xf0]  ;;  %v3171_v27 = vld [vmem:[#allocation4 + $0x294] sm:$0xf]  ;;  %v2834_v28 = vld [vmem:[#allocation4 + $0x298] sm:$0xf0] }
 0x29b   :  { %1758 = vmatpush.bf16.msra.mxu1 %v2509_v35  ;;  %1793 = vmatpush.bf16.msrb.mxu0 %v2733_v36  ;;  %v2914_v35 = vld [vmem:[#allocation4 + $0x338] sm:$0xf0]  ;;  %v2789_v36 = vor.u32 %v3159_v24, %v2786_v26  ;;  %v2970_v24 = vld [vmem:[#allocation4 + $0x3a8] sm:$0xf0]  ;;  %v2845_v26 = vor.u32 %v3173_v20, %v2842_v21  ;;  %v1981_v21 = vld [vmem:[#allocation7 + $0x3e0] sm:$0xff] }
 0x29c   :  { %1720 = vmatmul.bf16.vlgmr.msrb.gmra.mxu2 %v3855_v48  ;;  %v1896_v20 = vld [vmem:[#allocation7 + $0x138] sm:$0xff] }
 0x29d   :  { %1768 = vmatpush.bf16.msra.mxu2 %v2597_v44  ;;  %1784 = vmatpush.bf16.msra.mxu3 %v2637_v45  ;;  %v2917_v44 = vor.u32 %v3191_v34, %v2914_v35  ;;  %v3179_v45 = vld [vmem:[#allocation4 + $0x2d4] sm:$0xf]  ;;  %v1910_v34 = vld [vmem:[#allocation7 + $0x1a8] sm:$0xff]  ;;  %v2837_v35 = vor.u32 %v3171_v27, %v2834_v28  ;;  %v1888_v27 = vld [vmem:[#allocation7 + $0xf8] sm:$0xff] }
 0x29e   :  { %1746 = vmatmul.bf16.vlgmr.msra.gmra.mxu0 %v3858_v41  ;;  %1759 = vmatmul.bf16.vlgmr.msra.gmra.mxu1 %v3827_v9  ;;  %v2709_v9 = vor.u32 %v3139_v8, %v2706_v10  ;;  %v2869_v57 = vor.u32 %v3179_v45, %v2866_v46  ;;  %v3175_v10 = vld [vmem:[#allocation4 + $0x2b4] sm:$0xf]  ;;  %v1897_v46 = vld [vmem:[#allocation7 + $0x140] sm:$0xff] }
 0x29f   :  { %1803 = vmatpush.bf16.msrb.mxu1 %v2821_v39  ;;  %1794 = vmatpush.bf16.msrb.mxu0 %v2725_v53  ;;  %v2778_v39 = vld [vmem:[#allocation4 + $0x228] sm:$0xf0]  ;;  %v3155_v53 = vld [vmem:[#allocation4 + $0x214] sm:$0xf]  ;;  %v1973_v28 = vld [vmem:[#allocation7 + $0x3a0] sm:$0xff] }
 0x2a0   :  { %1785 = vmatmul.bf16.vlgmr.msra.gmra.mxu3 %v3831_v17  ;;  %v3137_v17 = vld [vmem:[#allocation4 + $0x184] sm:$0xf]  ;;  %v2781_v51 = vor.u32 %v3157_v38, %v2778_v39  ;;  %v2773_v1 = vor.u32 %v3155_v53, %v2770_v54  ;;  %v2826_v38 = vld [vmem:[#allocation4 + $0x288] sm:$0xf0] }
 0x2a1   :  { %1829 = vmatpush.bf16.msrb.mxu3 %v2949_v50  ;;  %1769 = vmatpush.bf16.msra.mxu2 %v2589_v61  ;;  %v2701_v32 = vor.u32 %v3137_v17, %v2698_v23  ;;  %v2906_v50 = vld [vmem:[#allocation4 + $0x328] sm:$0xf0]  ;;  %v3177_v61 = vld [vmem:[#allocation4 + $0x2c4] sm:$0xf] }
 0x2a2   :  { %v2909_v60 = vor.u32 %v3189_v47, %v2906_v50  ;;  %v1918_v17 = vld [vmem:[#allocation7 + $0x1e8] sm:$0xff]  ;;  %v3205_v23 = vld [vmem:[#allocation4 + $0x3a4] sm:$0xf] }
 0x2a3   :  { %1804 = vmatpush.bf16.msrb.mxu1 %v2813_v56  ;;  %1795 = vmatpush.bf16.msrb.mxu0 %v2717_v4  ;;  %v2994_v56 = vld [vmem:[#allocation4 + $0x3d8] sm:$0xf0]  ;;  %v3153_v4 = vld [vmem:[#allocation4 + $0x204] sm:$0xf]  ;;  %v1898_v47 = vld [vmem:[#allocation7 + $0x148] sm:$0xff] }
 0x2a4   :  { %v2997_v3 = vor.u32 %v3211_v55, %v2994_v56  ;;  %v1893_v50 = vld [vmem:[#allocation7 + $0x120] sm:$0xff]  ;;  %v1890_v53 = vld [vmem:[#allocation7 + $0x108] sm:$0xff] }
 0x2a5   :  { %1830 = vmatpush.bf16.msrb.mxu3 %v2941_v0  ;;  %1770 = vmatpush.bf16.msra.mxu2 %v2581_v11  ;;  %v2898_v0 = vld [vmem:[#allocation4 + $0x318] sm:$0xf0]  ;;  %v1885_v54 = vld [vmem:[#allocation7 + $0xe0] sm:$0xff]  ;;  %v1886_v55 = vld [vmem:[#allocation7 + $0xe8] sm:$0xff] }
 0x2a6   :  { %v2901_v8 = vor.u32 %v3187_v63, %v2898_v0  ;;  %v2850_v11 = vld [vmem:[#allocation4 + $0x2b8] sm:$0xf0]  ;;  %v1881_v56 = vld [vmem:[#allocation7 + $0xc0] sm:$0xff]  ;;  %v1870_v63 = vld [vmem:[#allocation7 + $0x68] sm:$0xff] }
 0x2a7   :  { %1805 = vmatpush.bf16.msrb.mxu1 %v2805_v7  ;;  %1796 = vmatpush.bf16.msrb.mxu0 %v2709_v9  ;;  %v2861_v7 = vor.u32 %v3177_v61, %v2858_v62  ;;  %v2853_v19 = vor.u32 %v3175_v10, %v2850_v11  ;;  %v2893_v9 = vor.u32 %v3185_v12, %v2890_v13  ;;  %v1874_v61 = vld [vmem:[#allocation7 + $0x88] sm:$0xff]  ;;  %v1869_v62 = vld [vmem:[#allocation7 + $0x60] sm:$0xff]  ;;  %v1916_v10 = vld [vmem:[#allocation7 + $0x1d8] sm:$0xff] }
 0x2a8   :  { %v1865_v0 = vld [vmem:[#allocation7 + $0x40] sm:$0xff]  ;;  %v1911_v11 = vld [vmem:[#allocation7 + $0x1b0] sm:$0xff]  ;;  %v1912_v12 = vld [vmem:[#allocation7 + $0x1b8] sm:$0xff] }
 0x2a9   :  { %1831 = vmatpush.bf16.msrb.mxu3 %v2933_v14  ;;  %1771 = vmatpush.bf16.msra.mxu2 %v2573_v25  ;;  %v1913_v25 = vld [vmem:[#allocation7 + $0x1c0] sm:$0xff]  ;;  %v1907_v13 = vld [vmem:[#allocation7 + $0x190] sm:$0xff] }
 0x2ab   :  { %1806 = vmatpush.bf16.msrb.mxu1 %v2797_v22  ;;  %1797 = vmatpush.bf16.msrb.mxu0 %v2701_v32  ;;  %v2981_v22 = vor.u32 %v3207_v15, %v2978_v18  ;;  %v3203_v32 = vld [vmem:[#allocation4 + $0x394] sm:$0xf]  ;;  %v1904_v15 = vld [vmem:[#allocation7 + $0x178] sm:$0xff] }
 0x2ac   :  { %1772 = vmatmul.bf16.vlgmr.msra.gmra.mxu2 %v3839_v49  ;;  %v3209_v49 = vld [vmem:[#allocation4 + $0x3c4] sm:$0xf]  ;;  %v2965_v39 = vor.u32 %v3203_v32, %v2962_v33  ;;  %v1883_v32 = vld [vmem:[#allocation7 + $0xd0] sm:$0xff]  ;;  %v1884_v33 = vld [vmem:[#allocation7 + $0xd8] sm:$0xff] }
 0x2ad   :  { %1816 = vmatpush.bf16.msrb.mxu2 %v2885_v29  ;;  %1832 = vmatpush.bf16.msrb.mxu3 %v2925_v30  ;;  %v2989_v14 = vor.u32 %v3209_v49, %v2986_v6  ;;  %v1914_v29 = vld [vmem:[#allocation7 + $0x1c8] sm:$0xff]  ;;  %v2973_v30 = vor.u32 %v3205_v23, %v2970_v24  ;;  %v1919_v6 = vld [vmem:[#allocation7 + $0x1f0] sm:$0xff]  ;;  %v1892_v23 = vld [vmem:[#allocation7 + $0x118] sm:$0xff] }
 0x2ae   :  { %1798 = vmatmul.bf16.vlgmr.msrb.gmra.mxu0 %v3844_v58  ;;  %v2765_v58 = vor.u32 %v3153_v4, %v2762_v5  ;;  %v1862_v4 = vld [vmem:[#allocation7 + $0x28] sm:$0xff]  ;;  %v1857_v5 = vld [vmem:[#allocation7] sm:$0xff] }
 0x2af   :  { %1807 = vmatpush.bf16.msrb.mxu1 %v2789_v36  ;;  %1842 = vmatpush.bf16.msra.mxu0 %v3013_v37  ;;  %v1905_v36 = vld [vmem:[#allocation7 + $0x180] sm:$0xff]  ;;  %v1858_v49 = vld [vmem:[#allocation7 + $0x8] sm:$0xff] }
 0x2b0   :  { %v3169_v37 = vld [vmem:[#allocation4 + $0x284] sm:$0xf] }
 0x2b1   :  { %1817 = vmatpush.bf16.msrb.mxu2 %v2877_v43  ;;  %1833 = vmatpush.bf16.msrb.mxu3 %v2917_v44  ;;  %v2954_v43 = vld [vmem:[#allocation4 + $0x388] sm:$0xf0]  ;;  %v1977_v24 = vld [vmem:[#allocation7 + $0x3c0] sm:$0xff] }
 0x2b2   :  { %v1902_v44 = vld [vmem:[#allocation7 + $0x168] sm:$0xff]  ;;  %v2957_v45 = vor.u32 %v3201_v42, %v2954_v43  ;;  %v1876_v42 = vld [vmem:[#allocation7 + $0x98] sm:$0xff]  ;;  %v1961_v43 = vld [vmem:[#allocation7 + $0x340] sm:$0xff] }
 0x2b3   :  { %1808 = vmatpush.bf16.msrb.mxu1 %v2781_v51  ;;  %1843 = vmatpush.bf16.msra.mxu0 %v3005_v52  ;;  %v1894_v51 = vld [vmem:[#allocation7 + $0x128] sm:$0xff]  ;;  %v1889_v52 = vld [vmem:[#allocation7 + $0x100] sm:$0xff] }
 0x2b5   :  { %1818 = vmatpush.bf16.msrb.mxu2 %v2869_v57  ;;  %1834 = vmatpush.bf16.msrb.mxu3 %v2909_v60  ;;  %v1877_v57 = vld [vmem:[#allocation7 + $0xa0] sm:$0xff] }
 0x2b6   :  { %v1873_v60 = vld [vmem:[#allocation7 + $0x80] sm:$0xff] }
 0x2b7   :  { %1809 = vmatpush.bf16.msrb.mxu1 %v2773_v1  ;;  %1844 = vmatpush.bf16.msra.mxu0 %v2997_v3  ;;  %v1866_v1 = vld [vmem:[#allocation7 + $0x48] sm:$0xff]  ;;  %v1861_v3 = vld [vmem:[#allocation7 + $0x20] sm:$0xff] }
 0x2b9   :  { %1819 = vmatpush.bf16.msrb.mxu2 %v2861_v7  ;;  %1835 = vmatpush.bf16.msrb.mxu3 %v2901_v8  ;;  %v1920_v7 = vld [vmem:[#allocation7 + $0x1f8] sm:$0xff]  ;;  %v1915_v8 = vld [vmem:[#allocation7 + $0x1d0] sm:$0xff] }
 0x2bb   :  { %1810 = vmatpush.bf16.msrb.mxu1 %v2765_v58  ;;  %1845 = vmatpush.bf16.msra.mxu0 %v2989_v14  ;;  %v1908_v58 = vld [vmem:[#allocation7 + $0x198] sm:$0xff]  ;;  %v1903_v14 = vld [vmem:[#allocation7 + $0x170] sm:$0xff] }
 0x2bd   :  { %1820 = vmatpush.bf16.msrb.mxu2 %v2853_v19  ;;  %1836 = vmatpush.bf16.msrb.mxu3 %v2893_v9  ;;  %v1899_v19 = vld [vmem:[#allocation7 + $0x150] sm:$0xff]  ;;  %v1900_v9 = vld [vmem:[#allocation7 + $0x158] sm:$0xff] }
 0x2be   :  { %1811 = vmatmul.bf16.vlgmr.msrb.gmra.mxu1 %v3846_v59  ;;  %v1906_v59 = vld [vmem:[#allocation7 + $0x188] sm:$0xff] }
 0x2bf   :  { %1995 = vmatpush.msra.mxu1 %v1917_v16  ;;  %1846 = vmatpush.bf16.msra.mxu0 %v2981_v22  ;;  %v1895_v16 = vld [vmem:[#allocation7 + $0x130] sm:$0xff]  ;;  %v1982_v22 = vld [vmem:[#allocation7 + $0x3e8] sm:$0xff] }
 0x2c0   :  { %1837 = vmatmul.bf16.vlgmr.msrb.gmra.mxu3 %v3850_v2  ;;  %v2829_v2 = vor.u32 %v3169_v37, %v2826_v38  ;;  %v1880_v37 = vld [vmem:[#allocation7 + $0xb8] sm:$0xff]  ;;  %v1965_v38 = vld [vmem:[#allocation7 + $0x360] sm:$0xff] }
 0x2c1   :  { %2035 = vmatpush.msra.mxu3 %v1918_v17  ;;  %1996 = vmatpush.msra.mxu1 %v1913_v25  ;;  %v1891_v17 = vld [vmem:[#allocation7 + $0x110] sm:$0xff]  ;;  %v1978_v25 = vld [vmem:[#allocation7 + $0x3c8] sm:$0xff] }
 0x2c2   :  { %1821 = vmatpush.bf16.msrb.mxu2 %v2845_v26  ;;  %v1887_v26 = vld [vmem:[#allocation7 + $0xf0] sm:$0xff] }
 0x2c3   :  { %2036 = vmatpush.msra.mxu3 %v1914_v29  ;;  %1997 = vmatpush.msra.mxu1 %v1909_v31  ;;  %v1974_v29 = vld [vmem:[#allocation7 + $0x3a8] sm:$0xff] }
 0x2c4   :  { %1847 = vmatpush.bf16.msra.mxu0 %v2973_v30 }
 0x2c5   :  { %2037 = vmatpush.msra.mxu3 %v1910_v34  ;;  %1998 = vmatpush.msra.mxu1 %v1905_v36  ;;  %v1969_v34 = vld [vmem:[#allocation7 + $0x380] sm:$0xff]  ;;  %v1879_v36 = vld [vmem:[#allocation7 + $0xb0] sm:$0xff] }
 0x2c6   :  { %1822 = vmatpush.bf16.msrb.mxu2 %v2837_v35  ;;  %v1970_v35 = vld [vmem:[#allocation7 + $0x388] sm:$0xff] }
 0x2c7   :  { %2038 = vmatpush.msra.mxu3 %v1906_v59  ;;  %1999 = vmatpush.msra.mxu1 %v1901_v40  ;;  %v1966_v59 = vld [vmem:[#allocation7 + $0x368] sm:$0xff]  ;;  %v1875_v40 = vld [vmem:[#allocation7 + $0x90] sm:$0xff] }
 0x2c8   :  { %1848 = vmatpush.bf16.msra.mxu0 %v2965_v39  ;;  %v3876_v39 = vld [vmem:[%s3907_s8] sm:$0x3] }
 0x2c9   :  { %2039 = vmatpush.msra.mxu3 %v1902_v44  ;;  %2000 = vmatpush.msra.mxu1 %v1897_v46  ;;  %v1962_v44 = vld [vmem:[#allocation7 + $0x348] sm:$0xff]  ;;  %v1957_v46 = vld [vmem:[#allocation7 + $0x320] sm:$0xff] }
 0x2ca   :  { %1823 = vmatpush.bf16.msrb.mxu2 %v2829_v2  ;;  %v1871_v2 = vld [vmem:[#allocation7 + $0x70] sm:$0xff] }
 0x2cb   :  { %2040 = vmatpush.msra.mxu3 %v1898_v47  ;;  %2001 = vmatpush.msra.mxu1 %v1893_v50  ;;  %v1958_v47 = vld [vmem:[#allocation7 + $0x328] sm:$0xff] }
 0x2cc   :  { %1849 = vmatpush.bf16.msra.mxu0 %v2957_v45  ;;  %v1872_v45 = vld [vmem:[#allocation7 + $0x78] sm:$0xff] }
 0x2cd   :  { %1824 = vmatmul.bf16.vlgmr.msrb.gmra.mxu2 %v3855_v48  ;;  %2041 = vmatpush.msra.mxu3 %v1894_v51  ;;  %v1882_v48 = vld [vmem:[#allocation7 + $0xc8] sm:$0xff] }
 0x2ce   :  { %2002 = vmatpush.msra.mxu1 %v1889_v52  ;;  %2015 = vmatpush.msra.mxu2 %v1981_v21  ;;  %v1867_v52 = vld [vmem:[#allocation7 + $0x50] sm:$0xff]  ;;  %v1921_v21 = vld [vmem:[#allocation7 + $0x200] sm:$0xff] }
 0x2cf   :  { %1850 = vmatmul.bf16.vlgmr.msra.gmra.mxu0 %v3858_v41  ;;  %2042 = vmatpush.msra.mxu3 %v1890_v53  ;;  %v1878_v41 = vld [vmem:[#allocation7 + $0xa8] sm:$0xff]  ;;  %v1868_v53 = vld [vmem:[#allocation7 + $0x58] sm:$0xff] }
 0x2d0   :  { %2003 = vmatpush.msra.mxu1 %v1885_v54  ;;  %2055 = vmatpush.msrb.mxu0 %v1982_v22  ;;  %v1003_v54 = vperm.slane %v3876_v39, 0  ;;  %v1922_v22 = vld [vmem:[#allocation7 + $0x208] sm:$0xff] }
 0x2d1   :  { %2043 = vmatpush.msra.mxu3 %v1886_v55  ;;  %2016 = vmatpush.msra.mxu2 %v1977_v24  ;;  %v1983_v24 = vld [vmem:[#allocation7 + $0x3f0] sm:$0xff] }
 0x2d2   :  { %2004 = vmatpush.msra.mxu1 %v1881_v56  ;;  %2056 = vmatpush.msrb.mxu0 %v1978_v25  ;;  %v1953_v56 = vld [vmem:[#allocation7 + $0x300] sm:$0xff]  ;;  %v1984_v25 = vld [vmem:[#allocation7 + $0x3f8] sm:$0xff] }
 0x2d3   :  { %2044 = vmatpush.msra.mxu3 %v1882_v48  ;;  %2017 = vmatpush.msra.mxu2 %v1973_v28  ;;  %v1954_v48 = vld [vmem:[#allocation7 + $0x308] sm:$0xff] }
 0x2d4   :  { %2005 = vmatpush.msra.mxu1 %v1877_v57  ;;  %2057 = vmatpush.msrb.mxu0 %v1974_v29  ;;  %v1863_v57 = vld [vmem:[#allocation7 + $0x30] sm:$0xff] }
 0x2d5   :  { %2045 = vmatpush.msra.mxu3 %v1878_v41  ;;  %2018 = vmatpush.msra.mxu2 %v1969_v34  ;;  %v1864_v41 = vld [vmem:[#allocation7 + $0x38] sm:$0xff]  ;;  %v1979_v29 = vld [vmem:[#allocation7 + $0x3d0] sm:$0xff] }
 0x2d6   :  { %2006 = vmatpush.msra.mxu1 %v1873_v60  ;;  %2058 = vmatpush.msrb.mxu0 %v1970_v35  ;;  %v1949_v60 = vld [vmem:[#allocation7 + $0x2e0] sm:$0xff]  ;;  %v1971_v34 = vld [vmem:[#allocation7 + $0x390] sm:$0xff]  ;;  %v1972_v35 = vld [vmem:[#allocation7 + $0x398] sm:$0xff] }
 0x2d7   :  { %2046 = vmatpush.msra.mxu3 %v1874_v61  ;;  %2019 = vmatpush.msra.mxu2 %v1965_v38  ;;  %v1950_v61 = vld [vmem:[#allocation7 + $0x2e8] sm:$0xff] }
 0x2d8   :  { %2007 = vmatpush.msra.mxu1 %v1869_v62  ;;  %2059 = vmatpush.msrb.mxu0 %v1966_v59  ;;  %v1967_v59 = vld [vmem:[#allocation7 + $0x370] sm:$0xff] }
 0x2d9   :  { %2047 = vmatpush.msra.mxu3 %v1870_v63  ;;  %2020 = vmatpush.msra.mxu2 %v1961_v43  ;;  %v1859_v63 = vld [vmem:[#allocation7 + $0x10] sm:$0xff] }
 0x2da   :  { %2008 = vmatpush.msra.mxu1 %v1865_v0  ;;  %2060 = vmatpush.msrb.mxu0 %v1962_v44  ;;  %v1860_v0 = vld [vmem:[#allocation7 + $0x18] sm:$0xff] }
 0x2db   :  { %2048 = vmatpush.msra.mxu3 %v1866_v1  ;;  %2021 = vmatpush.msra.mxu2 %v1957_v46  ;;  %v1964_v46 = vld [vmem:[#allocation7 + $0x358] sm:$0xff] }
 0x2dc   :  { %2009 = vmatpush.msra.mxu1 %v1861_v3  ;;  %2061 = vmatpush.msrb.mxu0 %v1958_v47  ;;  %v1945_v3 = vld [vmem:[#allocation7 + $0x2c0] sm:$0xff]  ;;  %v1959_v47 = vld [vmem:[#allocation7 + $0x330] sm:$0xff] }
 0x2dd   :  { %2049 = vmatpush.msra.mxu3 %v1862_v4  ;;  %2022 = vmatpush.msra.mxu2 %v1953_v56  ;;  %v1946_v4 = vld [vmem:[#allocation7 + $0x2c8] sm:$0xff]  ;;  %v1952_v56 = vld [vmem:[#allocation7 + $0x2f8] sm:$0xff] }
 0x2de   :  { %2010 = vmatpush.msra.mxu1 %v1857_v5  ;;  %2062 = vmatpush.msrb.mxu0 %v1954_v48  ;;  %v1947_v48 = vld [vmem:[#allocation7 + $0x2d0] sm:$0xff] }
 0x2df   :  { %2050 = vmatpush.msra.mxu3 %v1858_v49  ;;  %2023 = vmatpush.msra.mxu2 %v1949_v60  ;;  %v1941_v49 = vld [vmem:[#allocation7 + $0x2a0] sm:$0xff]  ;;  %v1943_v60 = vld [vmem:[#allocation7 + $0x2b0] sm:$0xff] }
 0x2e0   :  { %2075 = vmatpush.msrb.mxu1 %v1919_v6  ;;  %2063 = vmatpush.msrb.mxu0 %v1950_v61  ;;  %v1942_v6 = vld [vmem:[#allocation7 + $0x2a8] sm:$0xff]  ;;  %v1944_v61 = vld [vmem:[#allocation7 + $0x2b8] sm:$0xff] }
 0x2e1   :  { %2115 = vmatpush.msrb.mxu3 %v1920_v7  ;;  %2024 = vmatpush.msra.mxu2 %v1945_v3  ;;  %v1936_v3 = vld [vmem:[#allocation7 + $0x278] sm:$0xff] }
 0x2e2   :  { %2076 = vmatpush.msrb.mxu1 %v1915_v8  ;;  %2064 = vmatpush.msrb.mxu0 %v1946_v4  ;;  %v1931_v4 = vld [vmem:[#allocation7 + $0x250] sm:$0xff] }
 0x2e3   :  { %2116 = vmatpush.msrb.mxu3 %v1916_v10  ;;  %2025 = vmatpush.msra.mxu2 %v1941_v49 }
 0x2e4   :  { %2077 = vmatpush.msrb.mxu1 %v1911_v11  ;;  %2065 = vmatpush.msrb.mxu0 %v1942_v6  ;;  %v1937_v11 = vld [vmem:[#allocation7 + $0x280] sm:$0xff] }
 0x2e5   :  { %2117 = vmatpush.msrb.mxu3 %v1912_v12  ;;  %v1938_v12 = vld [vmem:[#allocation7 + $0x288] sm:$0xff]  ;;  %2026 = vmatpush.msra.mxu2 %v1937_v11  ;;  %v1924_v11 = vld [vmem:[#allocation7 + $0x218] sm:$0xff] }
 0x2e6   :  { %2078 = vmatpush.msrb.mxu1 %v1907_v13  ;;  %v1933_v13 = vld [vmem:[#allocation7 + $0x260] sm:$0xff]  ;;  %2066 = vmatpush.msrb.mxu0 %v1938_v12  ;;  %v1004_v12 = vperm.slane %v3876_v39, 1 }
 0x2e7   :  { %2118 = vmatpush.msrb.mxu3 %v1908_v58  ;;  %v1934_v58 = vld [vmem:[#allocation7 + $0x268] sm:$0xff]  ;;  %2027 = vmatpush.msra.mxu2 %v1933_v13 }
 0x2e8   :  { %2079 = vmatpush.msrb.mxu1 %v1903_v14  ;;  %2067 = vmatpush.msrb.mxu0 %v1934_v58 }
 0x2e9   :  { %2119 = vmatpush.msrb.mxu3 %v1904_v15 }
 0x2ea   :  { %2080 = vmatpush.msrb.mxu1 %v1899_v19  ;;  %v1930_v19 = vld [vmem:[#allocation7 + $0x248] sm:$0xff] }
 0x2eb   :  { %2120 = vmatpush.msrb.mxu3 %v1900_v9  ;;  %2068 = vmatpush.msrb.mxu0 %v1930_v19  ;;  %v1925_v9 = vld [vmem:[#allocation7 + $0x220] sm:$0xff] }
 0x2ec   :  { %2081 = vmatpush.msrb.mxu1 %v1895_v16  ;;  %v1926_v16 = vld [vmem:[#allocation7 + $0x228] sm:$0xff] }
 0x2ed   :  { %2121 = vmatpush.msrb.mxu3 %v1896_v20  ;;  %2069 = vmatpush.msrb.mxu0 %v1926_v16 }
 0x2ee   :  { %2082 = vmatpush.msrb.mxu1 %v1891_v17 }
 0x2ef   :  { %2122 = vmatpush.msrb.mxu3 %v1892_v23  ;;  %2070 = vmatpush.msrb.mxu0 %v1922_v22 }
 0x2f0   :  { %2083 = vmatpush.msrb.mxu1 %v1887_v26 }
 0x2f1   :  { %2123 = vmatpush.msrb.mxu3 %v1888_v27  ;;  %2135 = vmatpush.msra.mxu0 %v1984_v25 }
 0x2f2   :  { %2084 = vmatpush.msrb.mxu1 %v1883_v32  ;;  %v1975_v32 = vld [vmem:[#allocation7 + $0x3b0] sm:$0xff] }
 0x2f3   :  { %2124 = vmatpush.msrb.mxu3 %v1884_v33  ;;  %v1976_v33 = vld [vmem:[#allocation7 + $0x3b8] sm:$0xff] }
 0x2f4   :  { %2085 = vmatpush.msrb.mxu1 %v1879_v36 }
 0x2f5   :  { %2125 = vmatpush.msrb.mxu3 %v1880_v37 }
 0x2f6   :  { %2086 = vmatpush.msrb.mxu1 %v1875_v40  ;;  %v1968_v40 = vld [vmem:[#allocation7 + $0x378] sm:$0xff] }
 0x2f7   :  { %2126 = vmatpush.msrb.mxu3 %v1876_v42 }
 0x2f8   :  { %2087 = vmatpush.msrb.mxu1 %v1871_v2 }
 0x2f9   :  { %2127 = vmatpush.msrb.mxu3 %v1872_v45  ;;  %v1963_v45 = vld [vmem:[#allocation7 + $0x350] sm:$0xff] }
 0x2fa   :  { %2088 = vmatpush.msrb.mxu1 %v1867_v52  ;;  %v1955_v52 = vld [vmem:[#allocation7 + $0x310] sm:$0xff] }
 0x2fb   :  { %v3869_v18 = vpop.f32.mrf.mxu1  ;;  %2128 = vmatpush.msrb.mxu3 %v1868_v53  ;;  %v1956_v53 = vld [vmem:[#allocation7 + $0x318] sm:$0xff] }
 0x2fc   :  { %2089 = vmatpush.msrb.mxu1 %v1863_v57  ;;  %v1657_v1 = vadd.f32 %v3869_v18, %v1003_v54  ;;  %v1929_v18 = vld [vmem:[#allocation7 + $0x240] sm:$0xff]  ;;  %v1948_v57 = vld [vmem:[#allocation7 + $0x2d8] sm:$0xff] }
 0x2fd   :  { %2129 = vmatpush.msrb.mxu3 %v1864_v41  ;;  %2028 = vmatpush.msra.mxu2 %v1929_v18 }
 0x2fe   :  { %2090 = vmatpush.msrb.mxu1 %v1859_v63  ;;  %v1940_v63 = vld [vmem:[#allocation7 + $0x298] sm:$0xff] }
 0x2ff   :  { %2130 = vmatpush.msrb.mxu3 %v1860_v0  ;;  %2029 = vmatpush.msra.mxu2 %v1925_v9 }
 0x301   :  { %2030 = vmatpush.msra.mxu2 %v1921_v21 }
 0x303   :  { %v1658_v30 = vpop.f32.mrf.mxu1  ;;  %v3871_v31 = vpop.f32.mrf.mxu3  ;;  %2095 = vmatpush.msrb.mxu2 %v1983_v24 }
 0x304   :  { %v1980_v30 = vld [vmem:[#allocation7 + $0x3d8] sm:$0xff] }
 0x305   :  { %2096 = vmatpush.msrb.mxu2 %v1979_v29  ;;  %2136 = vmatpush.msra.mxu0 %v1980_v30 }
 0x307   :  { %2097 = vmatpush.msrb.mxu2 %v1975_v32  ;;  %2137 = vmatpush.msra.mxu0 %v1976_v33 }
 0x309   :  { %2098 = vmatpush.msrb.mxu2 %v1971_v34  ;;  %2138 = vmatpush.msra.mxu0 %v1972_v35 }
 0x30b   :  { %v1684_v50 = vpop.f32.mrf.mxu3  ;;  %v1695_v51 = vpop.f32.mrf.mxu0  ;;  %2099 = vmatpush.msrb.mxu2 %v1967_v59  ;;  %2139 = vmatpush.msra.mxu0 %v1968_v40 }
 0x30c   :  { %v1708_v55 = vpop.f32.mrf.mxu1  ;;  %v1960_v50 = vld [vmem:[#allocation7 + $0x338] sm:$0xff] }
 0x30d   :  { %2100 = vmatpush.msrb.mxu2 %v1963_v45  ;;  %2140 = vmatpush.msra.mxu0 %v1964_v46 }
 0x30f   :  { %v1669_v62 = vpop.f32.mrf.mxu2  ;;  %2101 = vmatpush.msrb.mxu2 %v1959_v47  ;;  %2141 = vmatpush.msra.mxu0 %v1960_v50 }
 0x310   :  { %v1670_v5 = vadd.f32 %v1669_v62, %v1657_v1  ;;  %v1939_v62 = vld [vmem:[#allocation7 + $0x290] sm:$0xff] }
 0x311   :  { %2102 = vmatpush.msrb.mxu2 %v1955_v52  ;;  %2142 = vmatpush.msra.mxu0 %v1956_v53  ;;  %v1935_v1 = vld [vmem:[#allocation7 + $0x270] sm:$0xff] }
 0x312   :  { %v1683_v14 = vadd.f32 %v3871_v31, %v1670_v5  ;;  %v1932_v5 = vld [vmem:[#allocation7 + $0x258] sm:$0xff] }
 0x313   :  { %v1697_v7 = vpop.f32.mrf.mxu0  ;;  %v1734_v8 = vpop.f32.mrf.mxu3  ;;  %2143 = vmatpush.msra.mxu0 %v1952_v56 }
 0x314   :  { %v1710_v10 = vpop.f32.mrf.mxu1  ;;  %v1696_v20 = vadd.f32 %v1695_v51, %v1683_v14  ;;  %v1927_v7 = vld [vmem:[#allocation7 + $0x230] sm:$0xff] }
 0x315   :  { %2144 = vmatpush.msra.mxu0 %v1948_v57  ;;  %v1923_v10 = vld [vmem:[#allocation7 + $0x210] sm:$0xff] }
 0x316   :  { %v1709_v27 = vadd.f32 %v1708_v55, %v1696_v20  ;;  %v1951_v55 = vld [vmem:[#allocation7 + $0x2f0] sm:$0xff] }
 0x317   :  { %v1671_v15 = vpop.f32.mrf.mxu2  ;;  %2103 = vmatpush.msrb.mxu2 %v1951_v55  ;;  %2145 = vmatpush.msra.mxu0 %v1944_v61 }
 0x319   :  { %2104 = vmatpush.msrb.mxu2 %v1947_v48  ;;  %2146 = vmatpush.msra.mxu0 %v1940_v63 }
 0x31b   :  { %v1736_v17 = vpop.f32.mrf.mxu3  ;;  %v1747_v23 = vpop.f32.mrf.mxu0  ;;  %2105 = vmatpush.msrb.mxu2 %v1943_v60  ;;  %2147 = vmatpush.msra.mxu0 %v1936_v3 }
 0x31c   :  { %v3881_v26 = vpop.f32.mrf.mxu1 }
 0x31d   :  { %2106 = vmatpush.msrb.mxu2 %v1939_v62  ;;  %2148 = vmatpush.msra.mxu0 %v1932_v5  ;;  %v1761_v13 = vadd.f32 %v3881_v26, %v1004_v12  ;;  %v1985_v26 = vld [vmem:[%s3909_s10] sm:$0xf]  ;;  %s3352_s10 = smov [#allocation10]  }
 0x31e   :  { %v1990_v35 = vperm.slane %v1985_v26, 3  ;;  %s2184_s14 = sshll.u32 %s3352_s10, 4  ;;  %s2185_s14 = int_to_ptr.vmem [resolvable:$true] %s2184_s14 }
 0x31f   :  { %v1721_v28 = vpop.f32.mrf.mxu2  ;;  %2107 = vmatpush.msrb.mxu2 %v1935_v1 }
 0x320   :  { %v1722_v31 = vadd.f32 %v1721_v28, %v1709_v27  ;;  %v1988_v28 = vperm.slane %v1985_v26, 1 }
 0x321   :  { %2108 = vmatpush.msrb.mxu2 %v1931_v4 }
 0x322   :  { %v1735_v36 = vadd.f32 %v1734_v8, %v1722_v31  ;;  %v1928_v8 = vld [vmem:[#allocation7 + $0x238] sm:$0xff]  ;;  %v1987_v31 = vperm.slane %v1985_v26, 0 }
 0x323   :  { %v1749_v37 = vpop.f32.mrf.mxu0  ;;  %v3883_v38 = vpop.f32.mrf.mxu3  ;;  %2109 = vmatpush.msrb.mxu2 %v1927_v7  ;;  %2149 = vmatpush.msra.mxu0 %v1928_v8 }
 0x324   :  { %v1748_v42 = vadd.f32 %v1747_v23, %v1735_v36  ;;  %v1762_v43 = vpop.f32.mrf.mxu1 }
 0x325   :  { %2110 = vmatpush.msrb.mxu2 %v1923_v10  ;;  %2150 = vmatpush.msra.mxu0 %v1924_v11 }
 0x326   :  { %v1855_v44 = vmax.f32 %v1748_v42, 0.0  ;;  %v1989_v42 = vperm.slane %v1985_v26, 2 }
 0x327   :  { %v1723_v2 = vpop.f32.mrf.mxu2 }
 0x328   :  { %2011 = vmatmul.f32.vlgmr.msra.gmra.mxu1 %v1855_v44  ;;  %2051 = vmatmul.f32.vlgmr.msra.gmra.mxu3 %v1855_v44 }
 0x32b   :  { %v1788_v51 = vpop.f32.mrf.mxu3  ;;  %v1799_v54 = vpop.f32.mrf.mxu0 }
 0x32f   :  { %v1773_v41 = vpop.f32.mrf.mxu2 }
 0x330   :  { %2091 = vmatmul.f32.vlgmr.msrb.gmra.mxu1 %v1855_v44  ;;  %2131 = vmatmul.f32.vlgmr.msrb.gmra.mxu3 %v1855_v44  ;;  %v1774_v15 = vadd.f32 %v1773_v41, %v1761_v13 }
 0x332   :  { %v1787_v18 = vadd.f32 %v3883_v38, %v1774_v15 }
 0x333   :  { %v1801_v0 = vpop.f32.mrf.mxu0 }
 0x334   :  { %v1800_v16 = vadd.f32 %v1799_v54, %v1787_v18 }
 0x337   :  { %v1775_v49 = vpop.f32.mrf.mxu2 }
 0x33b   :  { %v1812_v6 = vpop.f32.mrf.mxu1 }
 0x33c   :  { %v1813_v20 = vadd.f32 %v1812_v6, %v1800_v16 }
 0x343   :  { %v1814_v58 = vpop.f32.mrf.mxu1  ;;  %v1838_v14 = vpop.f32.mrf.mxu3 }
 0x34b   :  { %v1840_v19 = vpop.f32.mrf.mxu3 }
 0x34c   :  { %v1851_v9 = vpop.f32.mrf.mxu0 }
 0x350   :  { %v1825_v21 = vpop.f32.mrf.mxu2 }
 0x351   :  { %v1826_v22 = vadd.f32 %v1825_v21, %v1813_v20 }
 0x353   :  { %v1839_v17 = vadd.f32 %v1838_v14, %v1826_v22 }
 0x354   :  { %v1853_v23 = vpop.f32.mrf.mxu0 }
 0x355   :  { %v1852_v39 = vadd.f32 %v1851_v9, %v1839_v17 }
 0x357   :  { %v1856_v24 = vmax.f32 %v1852_v39, 0.0 }
 0x358   :  { %v1827_v25 = vpop.f32.mrf.mxu2 }
 0x359   :  { %2031 = vmatmul.f32.vlgmr.msra.gmra.mxu2 %v1856_v24  ;;  %2071 = vmatmul.f32.vlgmr.msrb.gmra.mxu0 %v1856_v24 }
 0x361   :  { %2111 = vmatmul.f32.vlgmr.msrb.gmra.mxu2 %v1856_v24  ;;  %2151 = vmatmul.f32.vlgmr.msra.gmra.mxu0 %v1856_v24 }
 0x3a5   :  { %v2012_v29 = vpop.f32.mrf.mxu1 }
 0x3a6   :  { %v2013_v34 = vadd.f32 %v2012_v29, %v1987_v31 }
 0x3ab   :  { %v2052_v27 = vpop.f32.mrf.mxu3 }
 0x3ac   :  { %v2053_v32 = vadd.f32 %v2052_v27, %v1988_v28 }
 0x3ad   :  { %v2092_v2 = vpop.f32.mrf.mxu1 }
 0x3ae   :  { %v2093_v46 = vadd.f32 %v2092_v2, %v1989_v42 }
 0x3b3   :  { %v2132_v36 = vpop.f32.mrf.mxu3 }
 0x3b4   :  { %v2133_v43 = vadd.f32 %v2132_v36, %v1990_v35 }
 0x3d6   :  { %v2072_v30 = vpop.f32.mrf.mxu0 }
 0x3d7   :  { %v2073_v33 = vadd.f32 %v2072_v30, %v2053_v32 }
 0x3d9   :  { %v2157_v38 = vrot.slane %v2073_v33, 6 }
 0x3dc   :  { %v2032_v37 = vpop.f32.mrf.mxu2 }
 0x3dd   :  { %v2033_v59 = vadd.f32 %v2032_v37, %v2013_v34 }
 0x3de   :  { %v2152_v40 = vpop.f32.mrf.mxu0 }
 0x3df   :  { %v2159_v44 = vsel %vm2158_vm6, %v2033_v59, %v2157_v38  ;;  %v2153_v45 = vadd.f32 %v2152_v40, %v2133_v43 }
 0x3e0   :  { %2161 = vst [vmem:[#allocation9] sm:$0xf] %v2159_v44 }
 0x3e1   :  { %2178 = dma.vmem_to_hbm [thread:$0]  %s2174_s28, 64, %s2176_s13, [#allocation6]   ;;  %v2164_v50 = vrot.slane %v2153_v45, 6 }
 0x3e4   :  { %v2112_v47 = vpop.f32.mrf.mxu2 }
 0x3e5   :  { %v2113_v51 = vadd.f32 %v2112_v47, %v2093_v46 }
 0x3e7   :  { %v2165_v52 = vsel %vm2158_vm6, %v2113_v51, %v2164_v50 }
 0x3e8   :  { %2167 = vst [vmem:[#allocation10] sm:$0xf] %v2165_v52 }
 0x3e9   :  { %2189 = dma.vmem_to_hbm [thread:$0]  %s2185_s14, 64, %s2187_s15, [#allocation11]  }
 0x3ea   :  { %3336 = dma.done.wait [#allocation6], 64  }
 0x3eb   :  { %3337 = vsyncadd [#allocation6], 4294967232 }
 0x3ec   :  { %3338 = dma.done.wait [#allocation11], 64  }
 0x3ed   :  { %3339 = vsyncadd [#allocation11], 4294967232 }
 0x3ee   :  { %2198 = vsyncpa [#allocation5], 1 }
 0x3ef   :  { %2199 = vsyncpa [#allocation8], 1 }
 0x3f0   :  { %2200 = vsyncpa [#allocation6], 1 }
 0x3f1   :  { %2201 = vsyncpa [#allocation11], 1 }

</bundles_post_ra>
